<compile_context>
chip_gen: v7x
topology: tpu7x:2x2x1
jax: 0.10.0
libtpu: 0.0.40
codegen_flags: <defaults>
</compile_context>

<pallas_src>
import jax
import jax.numpy as jnp
from jax import lax
from jax.experimental import pallas as pl
from jax.experimental.pallas import tpu as pltpu


def _round_up(x: int, m: int) -> int:
    return (x + m - 1) // m * m


# ---------------------------------------------------------------------------
# Fused multi-layer LSTM kernel (one batch tile per grid step).
# ---------------------------------------------------------------------------
def _make_encoder_kernel(T, B_tile, H, n_layers, compute_dtype, unroll):
    G = 4 * H

    def kernel(*refs):
        x_ref = refs[0]                                   # (T, B, E) f32
        layer_refs = refs[1:1 + 3 * n_layers]             # (W_ih^T, W_hh^T, bias) per layer
        out_ref, hN_ref, cN_ref = refs[1 + 3 * n_layers:4 + 3 * n_layers]
        pre_ref = refs[4 + 3 * n_layers]                  # (T, B, 4H) f32 scratch

        for l in range(n_layers):
            wih_ref = layer_refs[3 * l + 0]               # (D_in, 4H) compute_dtype
            whh_ref = layer_refs[3 * l + 1]               # (H,    4H) compute_dtype
            b_ref = layer_refs[3 * l + 2]                 # (1,    4H) f32 (b_ih + b_hh)

            # ---- (1) input projection + bias for the whole sequence: one MXU GEMM.
            #      out_ref doubles as the inter-layer activation buffer (stays in VMEM).
            #      B_tile is a multiple of 8, so the (T,B,*) <-> (T*B,*) reshapes keep
            #      the lane dim and are layout-preserving.
            xin = x_ref[...] if l == 0 else out_ref[...]  # (T, B, D_in) f32
            d_in = xin.shape[-1]
            xin2 = xin.reshape(T * B_tile, d_in).astype(compute_dtype)
            pre = jnp.dot(xin2, wih_ref[...],
                          preferred_element_type=jnp.float32)          # (T*B, 4H) f32
            pre_ref[...] = (pre + b_ref[...]).reshape(T, B_tile, G)

            whh = whh_ref[...]                            # resident recurrent weight

            # ---- (2) sequential recurrence; h/c live in vregs (fori_loop carries).
            #      Per step: one small bf16 matmul + f32 gate math, one store of out[t].
            def step(t, carry):
                h, c = carry                              # (B, H) f32
                gates = pre_ref[t] + jnp.dot(
                    h.astype(compute_dtype), whh,
                    preferred_element_type=jnp.float32)   # (B, 4H) f32
                # NOTE: gate slices are lane-aligned when H is a multiple of 128.
                i_g = jax.nn.sigmoid(gates[:, 0 * H:1 * H])
                f_g = jax.nn.sigmoid(gates[:, 1 * H:2 * H])
                g_g = jnp.tanh(gates[:, 2 * H:3 * H])
                o_g = jax.nn.sigmoid(gates[:, 3 * H:4 * H])
                c_new = f_g * c + i_g * g_g
                h_new = o_g * jnp.tanh(c_new)
                out_ref[t] = h_new                        # this layer's output at step t
                return (h_new, c_new)

            init = (jnp.zeros((B_tile, H), jnp.float32),
                    jnp.zeros((B_tile, H), jnp.float32))
            h_fin, c_fin = lax.fori_loop(0, T, step, init, unroll=unroll)

            # ---- (3) final states: written once per layer (not every timestep).
            hN_ref[l] = h_fin
            cN_ref[l] = c_fin

    return kernel


def encoder_lstm(x, layer_params, *, compute_dtype=jnp.bfloat16, block_batch=None):
    """x: (T, B, E) f32.  layer_params: list of dicts with
    'w_ih_t' (D_in, 4H), 'w_hh_t' (H, 4H), 'bias' (1, 4H)  (f32).
    Returns outputs (T, B, H), h_n (L, B, H), c_n (L, B, H), all f32."""
    T, B, E = x.shape
    n_layers = len(layer_params)
    H = layer_params[0]["w_hh_t"].shape[0]
    G = 4 * H

    # Sublane-pad batch to a multiple of 8 (f32 sublanes); padded rows are dummy
    # sequences whose results are sliced away below.
    if block_batch is None:
        B_tile = _round_up(B, 8)
        B_pad = B_tile
    else:
        B_tile = _round_up(block_batch, 8)
        B_pad = _round_up(B, B_tile)
    nb = B_pad // B_tile
    if B_pad != B:
        x = jnp.pad(x, ((0, 0), (0, B_pad - B), (0, 0)))

    unroll = bool(T <= 32)  # short fixed recurrence: full unroll for scheduler visibility

    kernel = _make_encoder_kernel(T, B_tile, H, n_layers, compute_dtype, unroll)

    args = [x]
    in_specs = [pl.BlockSpec((T, B_tile, E), lambda b: (0, b, 0))]
    for p in layer_params:
        d_in = p["w_ih_t"].shape[0]
        args += [p["w_ih_t"].astype(compute_dtype),      # bf16 halves resident weight VMEM
                 p["w_hh_t"].astype(compute_dtype),
                 p["bias"].astype(jnp.float32)]          # bias added post-accumulation in f32
        in_specs += [
            pl.BlockSpec((d_in, G), lambda b: (0, 0)),   # W_ih^T (resident)
            pl.BlockSpec((H, G), lambda b: (0, 0)),      # W_hh^T (resident)
            pl.BlockSpec((1, G), lambda b: (0, 0)),      # fused bias (resident)
        ]

    out_shape = (
        jax.ShapeDtypeStruct((T, B_pad, H), jnp.float32),          # outputs
        jax.ShapeDtypeStruct((n_layers, B_pad, H), jnp.float32),   # h_n
        jax.ShapeDtypeStruct((n_layers, B_pad, H), jnp.float32),   # c_n
    )
    out_specs = [
        pl.BlockSpec((T, B_tile, H), lambda b: (0, b, 0)),
        pl.BlockSpec((n_layers, B_tile, H), lambda b: (0, b, 0)),
        pl.BlockSpec((n_layers, B_tile, H), lambda b: (0, b, 0)),
    ]

    outputs, hidden, cell = pl.pallas_call(
        kernel,
        out_shape=out_shape,
        grid_spec=pltpu.PrefetchScalarGridSpec(
            num_scalar_prefetch=0,
            grid=(nb,),                                   # batch tiles only; time is in-kernel
            in_specs=in_specs,
            out_specs=out_specs,
            scratch_shapes=[pltpu.VMEM((T, B_tile, G), jnp.float32)],  # pre-gates
        ),
        compiler_params=pltpu.CompilerParams(
            dimension_semantics=("parallel",),            # megacore sharding over batch (v7x)
        ),
    )(*args)

    if B_pad != B:
        outputs, hidden, cell = outputs[:, :B], hidden[:, :B], cell[:, :B]
    return outputs, hidden, cell


# ---------------------------------------------------------------------------
# Encoder wrapper (parameter setup + embedding gather = glue in plain JAX).
# ---------------------------------------------------------------------------
class Encoder:
    def __init__(self, input_dim, emb_dim, hid_dim, n_layers, dropout, key,
                 compute_dtype=jnp.bfloat16):
        self.input_dim, self.emb_dim = input_dim, emb_dim
        self.hid_dim, self.n_layers = hid_dim, n_layers
        self.dropout = dropout            # identity in eval mode
        self.compute_dtype = compute_dtype

        keys = jax.random.split(key, 1 + 4 * n_layers)
        # nn.Embedding default init: N(0, 1)
        self.embedding = jax.random.normal(keys[0], (input_dim, emb_dim), jnp.float32)

        # nn.LSTM default init: U(-1/sqrt(H), 1/sqrt(H)); gate order (i, f, g, o)
        k = 1.0 / jnp.sqrt(jnp.float32(hid_dim))
        self.layers = []
        for l in range(n_layers):
            d_in = emb_dim if l == 0 else hid_dim
            kk = keys[1 + 4 * l: 1 + 4 * (l + 1)]
            w_ih = jax.random.uniform(kk[0], (4 * hid_dim, d_in), jnp.float32, -k, k)
            w_hh = jax.random.uniform(kk[1], (4 * hid_dim, hid_dim), jnp.float32, -k, k)
            b_ih = jax.random.uniform(kk[2], (4 * hid_dim,), jnp.float32, -k, k)
            b_hh = jax.random.uniform(kk[3], (4 * hid_dim,), jnp.float32, -k, k)
            self.layers.append(dict(
                w_ih_t=w_ih.T,                               # (d_in, 4H)
                w_hh_t=w_hh.T,                               # (H, 4H)
                bias=(b_ih + b_hh).reshape(1, 4 * hid_dim),  # (1, 4H)
            ))

    def __call__(self, src):
        # src: (T, B) int32 token ids; embedding gather stays in plain JAX.
        embedded = jnp.take(self.embedding, src, axis=0)     # (T, B, E); dropout == identity (eval)
        return encoder_lstm(embedded, self.layers, compute_dtype=self.compute_dtype)


# ---------------------------------------------------------------------------
# Pure-JAX reference (correctness check only)
# ---------------------------------------------------------------------------
def _ref_lstm_layer(x, w_ih_t, w_hh_t, bias):
    T, B, _ = x.shape
    H = w_hh_t.shape[0]

    def step(carry, xt):
        h, c = carry
        gates = xt @ w_ih_t + h @ w_hh_t + bias
        i = jax.nn.sigmoid(gates[:, 0 * H:1 * H])
        f = jax.nn.sigmoid(gates[:, 1 * H:2 * H])
        g = jnp.tanh(gates[:, 2 * H:3 * H])
        o = jax.nn.sigmoid(gates[:, 3 * H:4 * H])
        c_new = f * c + i * g
        h_new = o * jnp.tanh(c_new)
        return (h_new, c_new), h_new

    init = (jnp.zeros((B, H), jnp.float32), jnp.zeros((B, H), jnp.float32))
    (h_n, c_n), outs = jax.lax.scan(step, init, x)
    return outs, h_n, c_n


def _ref_encoder(enc, src):
    x = jnp.take(enc.embedding, src, axis=0)
    hs, cs = [], []
    for p in enc.layers:
        x, h, c = _ref_lstm_layer(x, p["w_ih_t"], p["w_hh_t"], p["bias"])
        hs.append(h)
        cs.append(c)
    return x, jnp.stack(hs, 0), jnp.stack(cs, 0)


if __name__ == "__main__":
    key = jax.random.PRNGKey(0)
    input_dim, emb_dim, hid_dim, n_layers, dropout = 50, 16, 32, 2, 0.5
    seq_len, batch = 8, 2

    k_param, k_src = jax.random.split(key)
    enc = Encoder(input_dim, emb_dim, hid_dim, n_layers, dropout, k_param)
    src = jax.random.randint(k_src, (seq_len, batch), 0, input_dim, dtype=jnp.int32)

    # (a) performance path: bf16 MXU inputs, f32 accumulation / gate math.
    outputs, hidden, cell = enc(src)
    jax.block_until_ready((outputs, hidden, cell))

    r_out, r_hid, r_cell = _ref_encoder(enc, src)
    assert outputs.shape == (seq_len, batch, hid_dim)
    assert hidden.shape == (n_layers, batch, hid_dim)
    assert cell.shape == (n_layers, batch, hid_dim)
    assert jnp.allclose(outputs, r_out, atol=5e-2, rtol=5e-2)
    assert jnp.allclose(hidden, r_hid, atol=5e-2, rtol=5e-2)
    assert jnp.allclose(cell, r_cell, atol=5e-2, rtol=5e-2)

    # (b) f32 MXU path: tighter check of the kernel logic itself.
    enc.compute_dtype = jnp.float32
    o32, h32, c32 = enc(src)
    jax.block_until_ready((o32, h32, c32))
    assert jnp.allclose(o32, r_out, atol=1e-2, rtol=1e-2)
    assert jnp.allclose(h32, r_hid, atol=1e-2, rtol=1e-2)
    assert jnp.allclose(c32, r_cell, atol=1e-2, rtol=1e-2)

    print("KERNEL_OK")
</pallas_src>

<mosaic_0001>
module attributes {stable_mosaic.version = 11 : i64} {
  func.func @kernel(%arg0: i32, %arg1: memref<8x8x16xf32, #tpu.memory_space<vmem>>, %arg2: memref<16x128xbf16, #tpu.memory_space<vmem>>, %arg3: memref<32x128xbf16, #tpu.memory_space<vmem>>, %arg4: memref<1x128xf32, #tpu.memory_space<vmem>>, %arg5: memref<32x128xbf16, #tpu.memory_space<vmem>>, %arg6: memref<32x128xbf16, #tpu.memory_space<vmem>>, %arg7: memref<1x128xf32, #tpu.memory_space<vmem>>, %arg8: memref<8x8x32xf32, #tpu.memory_space<vmem>>, %arg9: memref<2x8x32xf32, #tpu.memory_space<vmem>>, %arg10: memref<2x8x32xf32, #tpu.memory_space<vmem>>, %arg11: memref<8x8x128xf32, #tpu.memory_space<vmem>>) attributes {dimension_semantics = [#tpu.dimension_semantics<parallel>], iteration_bounds = array<i64: 1>, scalar_prefetch = 0 : i64, scratch_operands = 1 : i64, tpu.core_type = #tpu.core_type<tc>, window_params = [{transform_indices = @transform_0, window_bounds = array<i64: 8, 8, 16>}, {pipeline_mode = #tpu.pipeline_mode<synchronous>, transform_indices = @transform_1, window_bounds = array<i64: 16, 128>}, {pipeline_mode = #tpu.pipeline_mode<synchronous>, transform_indices = @transform_2, window_bounds = array<i64: 32, 128>}, {pipeline_mode = #tpu.pipeline_mode<synchronous>, transform_indices = @transform_3, window_bounds = array<i64: 1, 128>}, {pipeline_mode = #tpu.pipeline_mode<synchronous>, transform_indices = @transform_4, window_bounds = array<i64: 32, 128>}, {pipeline_mode = #tpu.pipeline_mode<synchronous>, transform_indices = @transform_5, window_bounds = array<i64: 32, 128>}, {pipeline_mode = #tpu.pipeline_mode<synchronous>, transform_indices = @transform_6, window_bounds = array<i64: 1, 128>}, {transform_indices = @transform_7, window_bounds = array<i64: 8, 8, 32>}, {transform_indices = @transform_8, window_bounds = array<i64: 2, 8, 32>}, {transform_indices = @transform_9, window_bounds = array<i64: 2, 8, 32>}]} {
    %c0 = arith.constant 0 : index
    %c0_0 = arith.constant 0 : index
    %c0_1 = arith.constant 0 : index
    %0 = vector.load %arg1[%c0, %c0_0, %c0_1] : memref<8x8x16xf32, #tpu.memory_space<vmem>>, vector<8x8x16xf32>
    %1 = vector.shape_cast %0 : vector<8x8x16xf32> to vector<64x16xf32>
    %2 = arith.truncf %1 : vector<64x16xf32> to vector<64x16xbf16>
    %c0_2 = arith.constant 0 : index
    %c0_3 = arith.constant 0 : index
    %3 = vector.load %arg2[%c0_2, %c0_3] : memref<16x128xbf16, #tpu.memory_space<vmem>>, vector<16x128xbf16>
    %cst = arith.constant dense<0.000000e+00> : vector<64x128xf32>
    %4 = tpu.matmul %2, %3, %cst {dimension_numbers = #tpu.dot_dimension_numbers<[1], [0], [0], [1], [0, 0, 1, 1], [], []>} : vector<64x16xbf16>, vector<16x128xbf16>, vector<64x128xf32> -> vector<64x128xf32>
    %c0_4 = arith.constant 0 : index
    %c0_5 = arith.constant 0 : index
    %5 = vector.load %arg4[%c0_4, %c0_5] : memref<1x128xf32, #tpu.memory_space<vmem>>, vector<1x128xf32>
    %6 = vector.broadcast %5 : vector<1x128xf32> to vector<64x128xf32>
    %7 = arith.addf %4, %6 : vector<64x128xf32>
    %8 = vector.shape_cast %7 : vector<64x128xf32> to vector<8x8x128xf32>
    %c0_6 = arith.constant 0 : index
    %c0_7 = arith.constant 0 : index
    %c0_8 = arith.constant 0 : index
    %9 = vector.load %arg11[%c0_6, %c0_7, %c0_8] : memref<8x8x128xf32, #tpu.memory_space<vmem>>, vector<8x8x128xf32>
    tpu.vector_store %arg11[%c0_6, %c0_7, %c0_8], %8 {strides = array<i32>} : memref<8x8x128xf32, #tpu.memory_space<vmem>>, vector<8x8x128xf32>,
    %c0_9 = arith.constant 0 : index
    %c0_10 = arith.constant 0 : index
    %10 = vector.load %arg3[%c0_9, %c0_10] : memref<32x128xbf16, #tpu.memory_space<vmem>>, vector<32x128xbf16>
    %cst_11 = arith.constant 0.000000e+00 : f32
    %11 = vector.broadcast %cst_11 : f32 to vector<8x32xf32>
    %cst_12 = arith.constant 0.000000e+00 : f32
    %12 = vector.broadcast %cst_12 : f32 to vector<8x32xf32>
    %c0_i32 = arith.constant 0 : i32
    %13 = arith.index_cast %c0_i32 : i32 to index
    %c0_13 = arith.constant 0 : index
    %c0_14 = arith.constant 0 : index
    %14 = vector.load %arg11[%13, %c0_13, %c0_14] : memref<8x8x128xf32, #tpu.memory_space<vmem>>, vector<1x8x128xf32>
    %15 = vector.shape_cast %14 : vector<1x8x128xf32> to vector<8x128xf32>
    %16 = arith.truncf %11 : vector<8x32xf32> to vector<8x32xbf16>
    %cst_15 = arith.constant dense<0.000000e+00> : vector<8x128xf32>
    %17 = tpu.matmul %16, %10, %cst_15 {dimension_numbers = #tpu.dot_dimension_numbers<[1], [0], [0], [1], [0, 0, 1, 1], [], []>} : vector<8x32xbf16>, vector<32x128xbf16>, vector<8x128xf32> -> vector<8x128xf32>
    %18 = arith.addf %15, %17 : vector<8x128xf32>
    %19 = vector.extract_strided_slice %18 {offsets = [0, 0], sizes = [8, 32], strides = [1, 1]} : vector<8x128xf32> to vector<8x32xf32>
    %20 = arith.negf %19 : vector<8x32xf32>
    %21 = math.exp %20 : vector<8x32xf32>
    %cst_16 = arith.constant 1.000000e+00 : f32
    %22 = vector.broadcast %cst_16 : f32 to vector<8x32xf32>
    %23 = arith.addf %22, %21 : vector<8x32xf32>
    %24 = arith.divf %22, %23 : vector<8x32xf32>
    %25 = vector.extract_strided_slice %18 {offsets = [0, 32], sizes = [8, 32], strides = [1, 1]} : vector<8x128xf32> to vector<8x32xf32>
    %26 = arith.negf %25 : vector<8x32xf32>
    %27 = math.exp %26 : vector<8x32xf32>
    %cst_17 = arith.constant 1.000000e+00 : f32
    %28 = vector.broadcast %cst_17 : f32 to vector<8x32xf32>
    %29 = arith.addf %28, %27 : vector<8x32xf32>
    %30 = arith.divf %28, %29 : vector<8x32xf32>
    %31 = vector.extract_strided_slice %18 {offsets = [0, 64], sizes = [8, 32], strides = [1, 1]} : vector<8x128xf32> to vector<8x32xf32>
    %32 = math.tanh %31 : vector<8x32xf32>
    %33 = vector.extract_strided_slice %18 {offsets = [0, 96], sizes = [8, 32], strides = [1, 1]} : vector<8x128xf32> to vector<8x32xf32>
    %34 = arith.negf %33 : vector<8x32xf32>
    %35 = math.exp %34 : vector<8x32xf32>
    %cst_18 = arith.constant 1.000000e+00 : f32
    %36 = vector.broadcast %cst_18 : f32 to vector<8x32xf32>
    %37 = arith.addf %36, %35 : vector<8x32xf32>
    %38 = arith.divf %36, %37 : vector<8x32xf32>
    %39 = arith.mulf %30, %12 : vector<8x32xf32>
    %40 = arith.mulf %24, %32 : vector<8x32xf32>
    %41 = arith.addf %39, %40 : vector<8x32xf32>
    %42 = math.tanh %41 : vector<8x32xf32>
    %43 = arith.mulf %38, %42 : vector<8x32xf32>
    %44 = arith.index_cast %c0_i32 : i32 to index
    %c0_19 = arith.constant 0 : index
    %c0_20 = arith.constant 0 : index
    %45 = vector.load %arg8[%44, %c0_19, %c0_20] : memref<8x8x32xf32, #tpu.memory_space<vmem>>, vector<1x8x32xf32>
    %46 = vector.shape_cast %45 : vector<1x8x32xf32> to vector<8x32xf32>
    %47 = vector.shape_cast %43 : vector<8x32xf32> to vector<1x8x32xf32>
    tpu.vector_store %arg8[%44, %c0_19, %c0_20], %47 {strides = array<i32>} : memref<8x8x32xf32, #tpu.memory_space<vmem>>, vector<1x8x32xf32>,
    %c1_i32 = arith.constant 1 : i32
    %48 = arith.index_cast %c1_i32 : i32 to index
    %c0_21 = arith.constant 0 : index
    %c0_22 = arith.constant 0 : index
    %49 = vector.load %arg11[%48, %c0_21, %c0_22] : memref<8x8x128xf32, #tpu.memory_space<vmem>>, vector<1x8x128xf32>
    %50 = vector.shape_cast %49 : vector<1x8x128xf32> to vector<8x128xf32>
    %51 = arith.truncf %43 : vector<8x32xf32> to vector<8x32xbf16>
    %cst_23 = arith.constant dense<0.000000e+00> : vector<8x128xf32>
    %52 = tpu.matmul %51, %10, %cst_23 {dimension_numbers = #tpu.dot_dimension_numbers<[1], [0], [0], [1], [0, 0, 1, 1], [], []>} : vector<8x32xbf16>, vector<32x128xbf16>, vector<8x128xf32> -> vector<8x128xf32>
    %53 = arith.addf %50, %52 : vector<8x128xf32>
    %54 = vector.extract_strided_slice %53 {offsets = [0, 0], sizes = [8, 32], strides = [1, 1]} : vector<8x128xf32> to vector<8x32xf32>
    %55 = arith.negf %54 : vector<8x32xf32>
    %56 = math.exp %55 : vector<8x32xf32>
    %cst_24 = arith.constant 1.000000e+00 : f32
    %57 = vector.broadcast %cst_24 : f32 to vector<8x32xf32>
    %58 = arith.addf %57, %56 : vector<8x32xf32>
    %59 = arith.divf %57, %58 : vector<8x32xf32>
    %60 = vector.extract_strided_slice %53 {offsets = [0, 32], sizes = [8, 32], strides = [1, 1]} : vector<8x128xf32> to vector<8x32xf32>
    %61 = arith.negf %60 : vector<8x32xf32>
    %62 = math.exp %61 : vector<8x32xf32>
    %cst_25 = arith.constant 1.000000e+00 : f32
    %63 = vector.broadcast %cst_25 : f32 to vector<8x32xf32>
    %64 = arith.addf %63, %62 : vector<8x32xf32>
    %65 = arith.divf %63, %64 : vector<8x32xf32>
    %66 = vector.extract_strided_slice %53 {offsets = [0, 64], sizes = [8, 32], strides = [1, 1]} : vector<8x128xf32> to vector<8x32xf32>
    %67 = math.tanh %66 : vector<8x32xf32>
    %68 = vector.extract_strided_slice %53 {offsets = [0, 96], sizes = [8, 32], strides = [1, 1]} : vector<8x128xf32> to vector<8x32xf32>
    %69 = arith.negf %68 : vector<8x32xf32>
    %70 = math.exp %69 : vector<8x32xf32>
    %cst_26 = arith.constant 1.000000e+00 : f32
    %71 = vector.broadcast %cst_26 : f32 to vector<8x32xf32>
    %72 = arith.addf %71, %70 : vector<8x32xf32>
    %73 = arith.divf %71, %72 : vector<8x32xf32>
    %74 = arith.mulf %65, %41 : vector<8x32xf32>
    %75 = arith.mulf %59, %67 : vector<8x32xf32>
    %76 = arith.addf %74, %75 : vector<8x32xf32>
    %77 = math.tanh %76 : vector<8x32xf32>
    %78 = arith.mulf %73, %77 : vector<8x32xf32>
    %79 = arith.index_cast %c1_i32 : i32 to index
    %c0_27 = arith.constant 0 : index
    %c0_28 = arith.constant 0 : index
    %80 = vector.load %arg8[%79, %c0_27, %c0_28] : memref<8x8x32xf32, #tpu.memory_space<vmem>>, vector<1x8x32xf32>
    %81 = vector.shape_cast %80 : vector<1x8x32xf32> to vector<8x32xf32>
    %82 = vector.shape_cast %78 : vector<8x32xf32> to vector<1x8x32xf32>
    tpu.vector_store %arg8[%79, %c0_27, %c0_28], %82 {strides = array<i32>} : memref<8x8x32xf32, #tpu.memory_space<vmem>>, vector<1x8x32xf32>,
    %c2_i32 = arith.constant 2 : i32
    %83 = arith.index_cast %c2_i32 : i32 to index
    %c0_29 = arith.constant 0 : index
    %c0_30 = arith.constant 0 : index
    %84 = vector.load %arg11[%83, %c0_29, %c0_30] : memref<8x8x128xf32, #tpu.memory_space<vmem>>, vector<1x8x128xf32>
    %85 = vector.shape_cast %84 : vector<1x8x128xf32> to vector<8x128xf32>
    %86 = arith.truncf %78 : vector<8x32xf32> to vector<8x32xbf16>
    %cst_31 = arith.constant dense<0.000000e+00> : vector<8x128xf32>
    %87 = tpu.matmul %86, %10, %cst_31 {dimension_numbers = #tpu.dot_dimension_numbers<[1], [0], [0], [1], [0, 0, 1, 1], [], []>} : vector<8x32xbf16>, vector<32x128xbf16>, vector<8x128xf32> -> vector<8x128xf32>
    %88 = arith.addf %85, %87 : vector<8x128xf32>
    %89 = vector.extract_strided_slice %88 {offsets = [0, 0], sizes = [8, 32], strides = [1, 1]} : vector<8x128xf32> to vector<8x32xf32>
    %90 = arith.negf %89 : vector<8x32xf32>
    %91 = math.exp %90 : vector<8x32xf32>
    %cst_32 = arith.constant 1.000000e+00 : f32
    %92 = vector.broadcast %cst_32 : f32 to vector<8x32xf32>
    %93 = arith.addf %92, %91 : vector<8x32xf32>
    %94 = arith.divf %92, %93 : vector<8x32xf32>
    %95 = vector.extract_strided_slice %88 {offsets = [0, 32], sizes = [8, 32], strides = [1, 1]} : vector<8x128xf32> to vector<8x32xf32>
    %96 = arith.negf %95 : vector<8x32xf32>
    %97 = math.exp %96 : vector<8x32xf32>
    %cst_33 = arith.constant 1.000000e+00 : f32
    %98 = vector.broadcast %cst_33 : f32 to vector<8x32xf32>
    %99 = arith.addf %98, %97 : vector<8x32xf32>
    %100 = arith.divf %98, %99 : vector<8x32xf32>
    %101 = vector.extract_strided_slice %88 {offsets = [0, 64], sizes = [8, 32], strides = [1, 1]} : vector<8x128xf32> to vector<8x32xf32>
    %102 = math.tanh %101 : vector<8x32xf32>
    %103 = vector.extract_strided_slice %88 {offsets = [0, 96], sizes = [8, 32], strides = [1, 1]} : vector<8x128xf32> to vector<8x32xf32>
    %104 = arith.negf %103 : vector<8x32xf32>
    %105 = math.exp %104 : vector<8x32xf32>
    %cst_34 = arith.constant 1.000000e+00 : f32
    %106 = vector.broadcast %cst_34 : f32 to vector<8x32xf32>
    %107 = arith.addf %106, %105 : vector<8x32xf32>
    %108 = arith.divf %106, %107 : vector<8x32xf32>
    %109 = arith.mulf %100, %76 : vector<8x32xf32>
    %110 = arith.mulf %94, %102 : vector<8x32xf32>
    %111 = arith.addf %109, %110 : vector<8x32xf32>
    %112 = math.tanh %111 : vector<8x32xf32>
    %113 = arith.mulf %108, %112 : vector<8x32xf32>
    %114 = arith.index_cast %c2_i32 : i32 to index
    %c0_35 = arith.constant 0 : index
    %c0_36 = arith.constant 0 : index
    %115 = vector.load %arg8[%114, %c0_35, %c0_36] : memref<8x8x32xf32, #tpu.memory_space<vmem>>, vector<1x8x32xf32>
    %116 = vector.shape_cast %115 : vector<1x8x32xf32> to vector<8x32xf32>
    %117 = vector.shape_cast %113 : vector<8x32xf32> to vector<1x8x32xf32>
    tpu.vector_store %arg8[%114, %c0_35, %c0_36], %117 {strides = array<i32>} : memref<8x8x32xf32, #tpu.memory_space<vmem>>, vector<1x8x32xf32>,
    %c3_i32 = arith.constant 3 : i32
    %118 = arith.index_cast %c3_i32 : i32 to index
    %c0_37 = arith.constant 0 : index
    %c0_38 = arith.constant 0 : index
    %119 = vector.load %arg11[%118, %c0_37, %c0_38] : memref<8x8x128xf32, #tpu.memory_space<vmem>>, vector<1x8x128xf32>
    %120 = vector.shape_cast %119 : vector<1x8x128xf32> to vector<8x128xf32>
    %121 = arith.truncf %113 : vector<8x32xf32> to vector<8x32xbf16>
    %cst_39 = arith.constant dense<0.000000e+00> : vector<8x128xf32>
    %122 = tpu.matmul %121, %10, %cst_39 {dimension_numbers = #tpu.dot_dimension_numbers<[1], [0], [0], [1], [0, 0, 1, 1], [], []>} : vector<8x32xbf16>, vector<32x128xbf16>, vector<8x128xf32> -> vector<8x128xf32>
    %123 = arith.addf %120, %122 : vector<8x128xf32>
    %124 = vector.extract_strided_slice %123 {offsets = [0, 0], sizes = [8, 32], strides = [1, 1]} : vector<8x128xf32> to vector<8x32xf32>
    %125 = arith.negf %124 : vector<8x32xf32>
    %126 = math.exp %125 : vector<8x32xf32>
    %cst_40 = arith.constant 1.000000e+00 : f32
    %127 = vector.broadcast %cst_40 : f32 to vector<8x32xf32>
    %128 = arith.addf %127, %126 : vector<8x32xf32>
    %129 = arith.divf %127, %128 : vector<8x32xf32>
    %130 = vector.extract_strided_slice %123 {offsets = [0, 32], sizes = [8, 32], strides = [1, 1]} : vector<8x128xf32> to vector<8x32xf32>
    %131 = arith.negf %130 : vector<8x32xf32>
    %132 = math.exp %131 : vector<8x32xf32>
    %cst_41 = arith.constant 1.000000e+00 : f32
    %133 = vector.broadcast %cst_41 : f32 to vector<8x32xf32>
    %134 = arith.addf %133, %132 : vector<8x32xf32>
    %135 = arith.divf %133, %134 : vector<8x32xf32>
    %136 = vector.extract_strided_slice %123 {offsets = [0, 64], sizes = [8, 32], strides = [1, 1]} : vector<8x128xf32> to vector<8x32xf32>
    %137 = math.tanh %136 : vector<8x32xf32>
    %138 = vector.extract_strided_slice %123 {offsets = [0, 96], sizes = [8, 32], strides = [1, 1]} : vector<8x128xf32> to vector<8x32xf32>
    %139 = arith.negf %138 : vector<8x32xf32>
    %140 = math.exp %139 : vector<8x32xf32>
    %cst_42 = arith.constant 1.000000e+00 : f32
    %141 = vector.broadcast %cst_42 : f32 to vector<8x32xf32>
    %142 = arith.addf %141, %140 : vector<8x32xf32>
    %143 = arith.divf %141, %142 : vector<8x32xf32>
    %144 = arith.mulf %135, %111 : vector<8x32xf32>
    %145 = arith.mulf %129, %137 : vector<8x32xf32>
    %146 = arith.addf %144, %145 : vector<8x32xf32>
    %147 = math.tanh %146 : vector<8x32xf32>
    %148 = arith.mulf %143, %147 : vector<8x32xf32>
    %149 = arith.index_cast %c3_i32 : i32 to index
    %c0_43 = arith.constant 0 : index
    %c0_44 = arith.constant 0 : index
    %150 = vector.load %arg8[%149, %c0_43, %c0_44] : memref<8x8x32xf32, #tpu.memory_space<vmem>>, vector<1x8x32xf32>
    %151 = vector.shape_cast %150 : vector<1x8x32xf32> to vector<8x32xf32>
    %152 = vector.shape_cast %148 : vector<8x32xf32> to vector<1x8x32xf32>
    tpu.vector_store %arg8[%149, %c0_43, %c0_44], %152 {strides = array<i32>} : memref<8x8x32xf32, #tpu.memory_space<vmem>>, vector<1x8x32xf32>,
    %c4_i32 = arith.constant 4 : i32
    %153 = arith.index_cast %c4_i32 : i32 to index
    %c0_45 = arith.constant 0 : index
    %c0_46 = arith.constant 0 : index
    %154 = vector.load %arg11[%153, %c0_45, %c0_46] : memref<8x8x128xf32, #tpu.memory_space<vmem>>, vector<1x8x128xf32>
    %155 = vector.shape_cast %154 : vector<1x8x128xf32> to vector<8x128xf32>
    %156 = arith.truncf %148 : vector<8x32xf32> to vector<8x32xbf16>
    %cst_47 = arith.constant dense<0.000000e+00> : vector<8x128xf32>
    %157 = tpu.matmul %156, %10, %cst_47 {dimension_numbers = #tpu.dot_dimension_numbers<[1], [0], [0], [1], [0, 0, 1, 1], [], []>} : vector<8x32xbf16>, vector<32x128xbf16>, vector<8x128xf32> -> vector<8x128xf32>
    %158 = arith.addf %155, %157 : vector<8x128xf32>
    %159 = vector.extract_strided_slice %158 {offsets = [0, 0], sizes = [8, 32], strides = [1, 1]} : vector<8x128xf32> to vector<8x32xf32>
    %160 = arith.negf %159 : vector<8x32xf32>
    %161 = math.exp %160 : vector<8x32xf32>
    %cst_48 = arith.constant 1.000000e+00 : f32
    %162 = vector.broadcast %cst_48 : f32 to vector<8x32xf32>
    %163 = arith.addf %162, %161 : vector<8x32xf32>
    %164 = arith.divf %162, %163 : vector<8x32xf32>
    %165 = vector.extract_strided_slice %158 {offsets = [0, 32], sizes = [8, 32], strides = [1, 1]} : vector<8x128xf32> to vector<8x32xf32>
    %166 = arith.negf %165 : vector<8x32xf32>
    %167 = math.exp %166 : vector<8x32xf32>
    %cst_49 = arith.constant 1.000000e+00 : f32
    %168 = vector.broadcast %cst_49 : f32 to vector<8x32xf32>
    %169 = arith.addf %168, %167 : vector<8x32xf32>
    %170 = arith.divf %168, %169 : vector<8x32xf32>
    %171 = vector.extract_strided_slice %158 {offsets = [0, 64], sizes = [8, 32], strides = [1, 1]} : vector<8x128xf32> to vector<8x32xf32>
    %172 = math.tanh %171 : vector<8x32xf32>
    %173 = vector.extract_strided_slice %158 {offsets = [0, 96], sizes = [8, 32], strides = [1, 1]} : vector<8x128xf32> to vector<8x32xf32>
    %174 = arith.negf %173 : vector<8x32xf32>
    %175 = math.exp %174 : vector<8x32xf32>
    %cst_50 = arith.constant 1.000000e+00 : f32
    %176 = vector.broadcast %cst_50 : f32 to vector<8x32xf32>
    %177 = arith.addf %176, %175 : vector<8x32xf32>
    %178 = arith.divf %176, %177 : vector<8x32xf32>
    %179 = arith.mulf %170, %146 : vector<8x32xf32>
    %180 = arith.mulf %164, %172 : vector<8x32xf32>
    %181 = arith.addf %179, %180 : vector<8x32xf32>
    %182 = math.tanh %181 : vector<8x32xf32>
    %183 = arith.mulf %178, %182 : vector<8x32xf32>
    %184 = arith.index_cast %c4_i32 : i32 to index
    %c0_51 = arith.constant 0 : index
    %c0_52 = arith.constant 0 : index
    %185 = vector.load %arg8[%184, %c0_51, %c0_52] : memref<8x8x32xf32, #tpu.memory_space<vmem>>, vector<1x8x32xf32>
    %186 = vector.shape_cast %185 : vector<1x8x32xf32> to vector<8x32xf32>
    %187 = vector.shape_cast %183 : vector<8x32xf32> to vector<1x8x32xf32>
    tpu.vector_store %arg8[%184, %c0_51, %c0_52], %187 {strides = array<i32>} : memref<8x8x32xf32, #tpu.memory_space<vmem>>, vector<1x8x32xf32>,
    %c5_i32 = arith.constant 5 : i32
    %188 = arith.index_cast %c5_i32 : i32 to index
    %c0_53 = arith.constant 0 : index
    %c0_54 = arith.constant 0 : index
    %189 = vector.load %arg11[%188, %c0_53, %c0_54] : memref<8x8x128xf32, #tpu.memory_space<vmem>>, vector<1x8x128xf32>
    %190 = vector.shape_cast %189 : vector<1x8x128xf32> to vector<8x128xf32>
    %191 = arith.truncf %183 : vector<8x32xf32> to vector<8x32xbf16>
    %cst_55 = arith.constant dense<0.000000e+00> : vector<8x128xf32>
    %192 = tpu.matmul %191, %10, %cst_55 {dimension_numbers = #tpu.dot_dimension_numbers<[1], [0], [0], [1], [0, 0, 1, 1], [], []>} : vector<8x32xbf16>, vector<32x128xbf16>, vector<8x128xf32> -> vector<8x128xf32>
    %193 = arith.addf %190, %192 : vector<8x128xf32>
    %194 = vector.extract_strided_slice %193 {offsets = [0, 0], sizes = [8, 32], strides = [1, 1]} : vector<8x128xf32> to vector<8x32xf32>
    %195 = arith.negf %194 : vector<8x32xf32>
    %196 = math.exp %195 : vector<8x32xf32>
    %cst_56 = arith.constant 1.000000e+00 : f32
    %197 = vector.broadcast %cst_56 : f32 to vector<8x32xf32>
    %198 = arith.addf %197, %196 : vector<8x32xf32>
    %199 = arith.divf %197, %198 : vector<8x32xf32>
    %200 = vector.extract_strided_slice %193 {offsets = [0, 32], sizes = [8, 32], strides = [1, 1]} : vector<8x128xf32> to vector<8x32xf32>
    %201 = arith.negf %200 : vector<8x32xf32>
    %202 = math.exp %201 : vector<8x32xf32>
    %cst_57 = arith.constant 1.000000e+00 : f32
    %203 = vector.broadcast %cst_57 : f32 to vector<8x32xf32>
    %204 = arith.addf %203, %202 : vector<8x32xf32>
    %205 = arith.divf %203, %204 : vector<8x32xf32>
    %206 = vector.extract_strided_slice %193 {offsets = [0, 64], sizes = [8, 32], strides = [1, 1]} : vector<8x128xf32> to vector<8x32xf32>
    %207 = math.tanh %206 : vector<8x32xf32>
    %208 = vector.extract_strided_slice %193 {offsets = [0, 96], sizes = [8, 32], strides = [1, 1]} : vector<8x128xf32> to vector<8x32xf32>
    %209 = arith.negf %208 : vector<8x32xf32>
    %210 = math.exp %209 : vector<8x32xf32>
    %cst_58 = arith.constant 1.000000e+00 : f32
    %211 = vector.broadcast %cst_58 : f32 to vector<8x32xf32>
    %212 = arith.addf %211, %210 : vector<8x32xf32>
    %213 = arith.divf %211, %212 : vector<8x32xf32>
    %214 = arith.mulf %205, %181 : vector<8x32xf32>
    %215 = arith.mulf %199, %207 : vector<8x32xf32>
    %216 = arith.addf %214, %215 : vector<8x32xf32>
    %217 = math.tanh %216 : vector<8x32xf32>
    %218 = arith.mulf %213, %217 : vector<8x32xf32>
    %219 = arith.index_cast %c5_i32 : i32 to index
    %c0_59 = arith.constant 0 : index
    %c0_60 = arith.constant 0 : index
    %220 = vector.load %arg8[%219, %c0_59, %c0_60] : memref<8x8x32xf32, #tpu.memory_space<vmem>>, vector<1x8x32xf32>
    %221 = vector.shape_cast %220 : vector<1x8x32xf32> to vector<8x32xf32>
    %222 = vector.shape_cast %218 : vector<8x32xf32> to vector<1x8x32xf32>
    tpu.vector_store %arg8[%219, %c0_59, %c0_60], %222 {strides = array<i32>} : memref<8x8x32xf32, #tpu.memory_space<vmem>>, vector<1x8x32xf32>,
    %c6_i32 = arith.constant 6 : i32
    %223 = arith.index_cast %c6_i32 : i32 to index
    %c0_61 = arith.constant 0 : index
    %c0_62 = arith.constant 0 : index
    %224 = vector.load %arg11[%223, %c0_61, %c0_62] : memref<8x8x128xf32, #tpu.memory_space<vmem>>, vector<1x8x128xf32>
    %225 = vector.shape_cast %224 : vector<1x8x128xf32> to vector<8x128xf32>
    %226 = arith.truncf %218 : vector<8x32xf32> to vector<8x32xbf16>
    %cst_63 = arith.constant dense<0.000000e+00> : vector<8x128xf32>
    %227 = tpu.matmul %226, %10, %cst_63 {dimension_numbers = #tpu.dot_dimension_numbers<[1], [0], [0], [1], [0, 0, 1, 1], [], []>} : vector<8x32xbf16>, vector<32x128xbf16>, vector<8x128xf32> -> vector<8x128xf32>
    %228 = arith.addf %225, %227 : vector<8x128xf32>
    %229 = vector.extract_strided_slice %228 {offsets = [0, 0], sizes = [8, 32], strides = [1, 1]} : vector<8x128xf32> to vector<8x32xf32>
    %230 = arith.negf %229 : vector<8x32xf32>
    %231 = math.exp %230 : vector<8x32xf32>
    %cst_64 = arith.constant 1.000000e+00 : f32
    %232 = vector.broadcast %cst_64 : f32 to vector<8x32xf32>
    %233 = arith.addf %232, %231 : vector<8x32xf32>
    %234 = arith.divf %232, %233 : vector<8x32xf32>
    %235 = vector.extract_strided_slice %228 {offsets = [0, 32], sizes = [8, 32], strides = [1, 1]} : vector<8x128xf32> to vector<8x32xf32>
    %236 = arith.negf %235 : vector<8x32xf32>
    %237 = math.exp %236 : vector<8x32xf32>
    %cst_65 = arith.constant 1.000000e+00 : f32
    %238 = vector.broadcast %cst_65 : f32 to vector<8x32xf32>
    %239 = arith.addf %238, %237 : vector<8x32xf32>
    %240 = arith.divf %238, %239 : vector<8x32xf32>
    %241 = vector.extract_strided_slice %228 {offsets = [0, 64], sizes = [8, 32], strides = [1, 1]} : vector<8x128xf32> to vector<8x32xf32>
    %242 = math.tanh %241 : vector<8x32xf32>
    %243 = vector.extract_strided_slice %228 {offsets = [0, 96], sizes = [8, 32], strides = [1, 1]} : vector<8x128xf32> to vector<8x32xf32>
    %244 = arith.negf %243 : vector<8x32xf32>
    %245 = math.exp %244 : vector<8x32xf32>
    %cst_66 = arith.constant 1.000000e+00 : f32
    %246 = vector.broadcast %cst_66 : f32 to vector<8x32xf32>
    %247 = arith.addf %246, %245 : vector<8x32xf32>
    %248 = arith.divf %246, %247 : vector<8x32xf32>
    %249 = arith.mulf %240, %216 : vector<8x32xf32>
    %250 = arith.mulf %234, %242 : vector<8x32xf32>
    %251 = arith.addf %249, %250 : vector<8x32xf32>
    %252 = math.tanh %251 : vector<8x32xf32>
    %253 = arith.mulf %248, %252 : vector<8x32xf32>
    %254 = arith.index_cast %c6_i32 : i32 to index
    %c0_67 = arith.constant 0 : index
    %c0_68 = arith.constant 0 : index
    %255 = vector.load %arg8[%254, %c0_67, %c0_68] : memref<8x8x32xf32, #tpu.memory_space<vmem>>, vector<1x8x32xf32>
    %256 = vector.shape_cast %255 : vector<1x8x32xf32> to vector<8x32xf32>
    %257 = vector.shape_cast %253 : vector<8x32xf32> to vector<1x8x32xf32>
    tpu.vector_store %arg8[%254, %c0_67, %c0_68], %257 {strides = array<i32>} : memref<8x8x32xf32, #tpu.memory_space<vmem>>, vector<1x8x32xf32>,
    %c7_i32 = arith.constant 7 : i32
    %258 = arith.index_cast %c7_i32 : i32 to index
    %c0_69 = arith.constant 0 : index
    %c0_70 = arith.constant 0 : index
    %259 = vector.load %arg11[%258, %c0_69, %c0_70] : memref<8x8x128xf32, #tpu.memory_space<vmem>>, vector<1x8x128xf32>
    %260 = vector.shape_cast %259 : vector<1x8x128xf32> to vector<8x128xf32>
    %261 = arith.truncf %253 : vector<8x32xf32> to vector<8x32xbf16>
    %cst_71 = arith.constant dense<0.000000e+00> : vector<8x128xf32>
    %262 = tpu.matmul %261, %10, %cst_71 {dimension_numbers = #tpu.dot_dimension_numbers<[1], [0], [0], [1], [0, 0, 1, 1], [], []>} : vector<8x32xbf16>, vector<32x128xbf16>, vector<8x128xf32> -> vector<8x128xf32>
    %263 = arith.addf %260, %262 : vector<8x128xf32>
    %264 = vector.extract_strided_slice %263 {offsets = [0, 0], sizes = [8, 32], strides = [1, 1]} : vector<8x128xf32> to vector<8x32xf32>
    %265 = arith.negf %264 : vector<8x32xf32>
    %266 = math.exp %265 : vector<8x32xf32>
    %cst_72 = arith.constant 1.000000e+00 : f32
    %267 = vector.broadcast %cst_72 : f32 to vector<8x32xf32>
    %268 = arith.addf %267, %266 : vector<8x32xf32>
    %269 = arith.divf %267, %268 : vector<8x32xf32>
    %270 = vector.extract_strided_slice %263 {offsets = [0, 32], sizes = [8, 32], strides = [1, 1]} : vector<8x128xf32> to vector<8x32xf32>
    %271 = arith.negf %270 : vector<8x32xf32>
    %272 = math.exp %271 : vector<8x32xf32>
    %cst_73 = arith.constant 1.000000e+00 : f32
    %273 = vector.broadcast %cst_73 : f32 to vector<8x32xf32>
    %274 = arith.addf %273, %272 : vector<8x32xf32>
    %275 = arith.divf %273, %274 : vector<8x32xf32>
    %276 = vector.extract_strided_slice %263 {offsets = [0, 64], sizes = [8, 32], strides = [1, 1]} : vector<8x128xf32> to vector<8x32xf32>
    %277 = math.tanh %276 : vector<8x32xf32>
    %278 = vector.extract_strided_slice %263 {offsets = [0, 96], sizes = [8, 32], strides = [1, 1]} : vector<8x128xf32> to vector<8x32xf32>
    %279 = arith.negf %278 : vector<8x32xf32>
    %280 = math.exp %279 : vector<8x32xf32>
    %cst_74 = arith.constant 1.000000e+00 : f32
    %281 = vector.broadcast %cst_74 : f32 to vector<8x32xf32>
    %282 = arith.addf %281, %280 : vector<8x32xf32>
    %283 = arith.divf %281, %282 : vector<8x32xf32>
    %284 = arith.mulf %275, %251 : vector<8x32xf32>
    %285 = arith.mulf %269, %277 : vector<8x32xf32>
    %286 = arith.addf %284, %285 : vector<8x32xf32>
    %287 = math.tanh %286 : vector<8x32xf32>
    %288 = arith.mulf %283, %287 : vector<8x32xf32>
    %289 = arith.index_cast %c7_i32 : i32 to index
    %c0_75 = arith.constant 0 : index
    %c0_76 = arith.constant 0 : index
    %290 = vector.load %arg8[%289, %c0_75, %c0_76] : memref<8x8x32xf32, #tpu.memory_space<vmem>>, vector<1x8x32xf32>
    %291 = vector.shape_cast %290 : vector<1x8x32xf32> to vector<8x32xf32>
    %292 = vector.shape_cast %288 : vector<8x32xf32> to vector<1x8x32xf32>
    tpu.vector_store %arg8[%289, %c0_75, %c0_76], %292 {strides = array<i32>} : memref<8x8x32xf32, #tpu.memory_space<vmem>>, vector<1x8x32xf32>,
    %c8_i32 = arith.constant 8 : i32
    %c0_77 = arith.constant 0 : index
    %c0_78 = arith.constant 0 : index
    %c0_79 = arith.constant 0 : index
    %293 = vector.load %arg9[%c0_77, %c0_78, %c0_79] : memref<2x8x32xf32, #tpu.memory_space<vmem>>, vector<1x8x32xf32>
    %294 = vector.shape_cast %293 : vector<1x8x32xf32> to vector<8x32xf32>
    %295 = vector.shape_cast %288 : vector<8x32xf32> to vector<1x8x32xf32>
    tpu.vector_store %arg9[%c0_77, %c0_78, %c0_79], %295 {strides = array<i32>} : memref<2x8x32xf32, #tpu.memory_space<vmem>>, vector<1x8x32xf32>,
    %c0_80 = arith.constant 0 : index
    %c0_81 = arith.constant 0 : index
    %c0_82 = arith.constant 0 : index
    %296 = vector.load %arg10[%c0_80, %c0_81, %c0_82] : memref<2x8x32xf32, #tpu.memory_space<vmem>>, vector<1x8x32xf32>
    %297 = vector.shape_cast %296 : vector<1x8x32xf32> to vector<8x32xf32>
    %298 = vector.shape_cast %286 : vector<8x32xf32> to vector<1x8x32xf32>
    tpu.vector_store %arg10[%c0_80, %c0_81, %c0_82], %298 {strides = array<i32>} : memref<2x8x32xf32, #tpu.memory_space<vmem>>, vector<1x8x32xf32>,
    %c0_83 = arith.constant 0 : index
    %c0_84 = arith.constant 0 : index
    %c0_85 = arith.constant 0 : index
    %299 = vector.load %arg8[%c0_83, %c0_84, %c0_85] : memref<8x8x32xf32, #tpu.memory_space<vmem>>, vector<8x8x32xf32>
    %300 = vector.shape_cast %299 : vector<8x8x32xf32> to vector<64x32xf32>
    %301 = arith.truncf %300 : vector<64x32xf32> to vector<64x32xbf16>
    %c0_86 = arith.constant 0 : index
    %c0_87 = arith.constant 0 : index
    %302 = vector.load %arg5[%c0_86, %c0_87] : memref<32x128xbf16, #tpu.memory_space<vmem>>, vector<32x128xbf16>
    %cst_88 = arith.constant dense<0.000000e+00> : vector<64x128xf32>
    %303 = tpu.matmul %301, %302, %cst_88 {dimension_numbers = #tpu.dot_dimension_numbers<[1], [0], [0], [1], [0, 0, 1, 1], [], []>} : vector<64x32xbf16>, vector<32x128xbf16>, vector<64x128xf32> -> vector<64x128xf32>
    %c0_89 = arith.constant 0 : index
    %c0_90 = arith.constant 0 : index
    %304 = vector.load %arg7[%c0_89, %c0_90] : memref<1x128xf32, #tpu.memory_space<vmem>>, vector<1x128xf32>
    %305 = vector.broadcast %304 : vector<1x128xf32> to vector<64x128xf32>
    %306 = arith.addf %303, %305 : vector<64x128xf32>
    %307 = vector.shape_cast %306 : vector<64x128xf32> to vector<8x8x128xf32>
    %c0_91 = arith.constant 0 : index
    %c0_92 = arith.constant 0 : index
    %c0_93 = arith.constant 0 : index
    %308 = vector.load %arg11[%c0_91, %c0_92, %c0_93] : memref<8x8x128xf32, #tpu.memory_space<vmem>>, vector<8x8x128xf32>
    tpu.vector_store %arg11[%c0_91, %c0_92, %c0_93], %307 {strides = array<i32>} : memref<8x8x128xf32, #tpu.memory_space<vmem>>, vector<8x8x128xf32>,
    %c0_94 = arith.constant 0 : index
    %c0_95 = arith.constant 0 : index
    %309 = vector.load %arg6[%c0_94, %c0_95] : memref<32x128xbf16, #tpu.memory_space<vmem>>, vector<32x128xbf16>
    %cst_96 = arith.constant 0.000000e+00 : f32
    %310 = vector.broadcast %cst_96 : f32 to vector<8x32xf32>
    %cst_97 = arith.constant 0.000000e+00 : f32
    %311 = vector.broadcast %cst_97 : f32 to vector<8x32xf32>
    %c0_i32_98 = arith.constant 0 : i32
    %312 = arith.index_cast %c0_i32_98 : i32 to index
    %c0_99 = arith.constant 0 : index
    %c0_100 = arith.constant 0 : index
    %313 = vector.load %arg11[%312, %c0_99, %c0_100] : memref<8x8x128xf32, #tpu.memory_space<vmem>>, vector<1x8x128xf32>
    %314 = vector.shape_cast %313 : vector<1x8x128xf32> to vector<8x128xf32>
    %315 = arith.truncf %310 : vector<8x32xf32> to vector<8x32xbf16>
    %cst_101 = arith.constant dense<0.000000e+00> : vector<8x128xf32>
    %316 = tpu.matmul %315, %309, %cst_101 {dimension_numbers = #tpu.dot_dimension_numbers<[1], [0], [0], [1], [0, 0, 1, 1], [], []>} : vector<8x32xbf16>, vector<32x128xbf16>, vector<8x128xf32> -> vector<8x128xf32>
    %317 = arith.addf %314, %316 : vector<8x128xf32>
    %318 = vector.extract_strided_slice %317 {offsets = [0, 0], sizes = [8, 32], strides = [1, 1]} : vector<8x128xf32> to vector<8x32xf32>
    %319 = arith.negf %318 : vector<8x32xf32>
    %320 = math.exp %319 : vector<8x32xf32>
    %cst_102 = arith.constant 1.000000e+00 : f32
    %321 = vector.broadcast %cst_102 : f32 to vector<8x32xf32>
    %322 = arith.addf %321, %320 : vector<8x32xf32>
    %323 = arith.divf %321, %322 : vector<8x32xf32>
    %324 = vector.extract_strided_slice %317 {offsets = [0, 32], sizes = [8, 32], strides = [1, 1]} : vector<8x128xf32> to vector<8x32xf32>
    %325 = arith.negf %324 : vector<8x32xf32>
    %326 = math.exp %325 : vector<8x32xf32>
    %cst_103 = arith.constant 1.000000e+00 : f32
    %327 = vector.broadcast %cst_103 : f32 to vector<8x32xf32>
    %328 = arith.addf %327, %326 : vector<8x32xf32>
    %329 = arith.divf %327, %328 : vector<8x32xf32>
    %330 = vector.extract_strided_slice %317 {offsets = [0, 64], sizes = [8, 32], strides = [1, 1]} : vector<8x128xf32> to vector<8x32xf32>
    %331 = math.tanh %330 : vector<8x32xf32>
    %332 = vector.extract_strided_slice %317 {offsets = [0, 96], sizes = [8, 32], strides = [1, 1]} : vector<8x128xf32> to vector<8x32xf32>
    %333 = arith.negf %332 : vector<8x32xf32>
    %334 = math.exp %333 : vector<8x32xf32>
    %cst_104 = arith.constant 1.000000e+00 : f32
    %335 = vector.broadcast %cst_104 : f32 to vector<8x32xf32>
    %336 = arith.addf %335, %334 : vector<8x32xf32>
    %337 = arith.divf %335, %336 : vector<8x32xf32>
    %338 = arith.mulf %329, %311 : vector<8x32xf32>
    %339 = arith.mulf %323, %331 : vector<8x32xf32>
    %340 = arith.addf %338, %339 : vector<8x32xf32>
    %341 = math.tanh %340 : vector<8x32xf32>
    %342 = arith.mulf %337, %341 : vector<8x32xf32>
    %343 = arith.index_cast %c0_i32_98 : i32 to index
    %c0_105 = arith.constant 0 : index
    %c0_106 = arith.constant 0 : index
    %344 = vector.load %arg8[%343, %c0_105, %c0_106] : memref<8x8x32xf32, #tpu.memory_space<vmem>>, vector<1x8x32xf32>
    %345 = vector.shape_cast %344 : vector<1x8x32xf32> to vector<8x32xf32>
    %346 = vector.shape_cast %342 : vector<8x32xf32> to vector<1x8x32xf32>
    tpu.vector_store %arg8[%343, %c0_105, %c0_106], %346 {strides = array<i32>} : memref<8x8x32xf32, #tpu.memory_space<vmem>>, vector<1x8x32xf32>,
    %c1_i32_107 = arith.constant 1 : i32
    %347 = arith.index_cast %c1_i32_107 : i32 to index
    %c0_108 = arith.constant 0 : index
    %c0_109 = arith.constant 0 : index
    %348 = vector.load %arg11[%347, %c0_108, %c0_109] : memref<8x8x128xf32, #tpu.memory_space<vmem>>, vector<1x8x128xf32>
    %349 = vector.shape_cast %348 : vector<1x8x128xf32> to vector<8x128xf32>
    %350 = arith.truncf %342 : vector<8x32xf32> to vector<8x32xbf16>
    %cst_110 = arith.constant dense<0.000000e+00> : vector<8x128xf32>
    %351 = tpu.matmul %350, %309, %cst_110 {dimension_numbers = #tpu.dot_dimension_numbers<[1], [0], [0], [1], [0, 0, 1, 1], [], []>} : vector<8x32xbf16>, vector<32x128xbf16>, vector<8x128xf32> -> vector<8x128xf32>
    %352 = arith.addf %349, %351 : vector<8x128xf32>
    %353 = vector.extract_strided_slice %352 {offsets = [0, 0], sizes = [8, 32], strides = [1, 1]} : vector<8x128xf32> to vector<8x32xf32>
    %354 = arith.negf %353 : vector<8x32xf32>
    %355 = math.exp %354 : vector<8x32xf32>
    %cst_111 = arith.constant 1.000000e+00 : f32
    %356 = vector.broadcast %cst_111 : f32 to vector<8x32xf32>
    %357 = arith.addf %356, %355 : vector<8x32xf32>
    %358 = arith.divf %356, %357 : vector<8x32xf32>
    %359 = vector.extract_strided_slice %352 {offsets = [0, 32], sizes = [8, 32], strides = [1, 1]} : vector<8x128xf32> to vector<8x32xf32>
    %360 = arith.negf %359 : vector<8x32xf32>
    %361 = math.exp %360 : vector<8x32xf32>
    %cst_112 = arith.constant 1.000000e+00 : f32
    %362 = vector.broadcast %cst_112 : f32 to vector<8x32xf32>
    %363 = arith.addf %362, %361 : vector<8x32xf32>
    %364 = arith.divf %362, %363 : vector<8x32xf32>
    %365 = vector.extract_strided_slice %352 {offsets = [0, 64], sizes = [8, 32], strides = [1, 1]} : vector<8x128xf32> to vector<8x32xf32>
    %366 = math.tanh %365 : vector<8x32xf32>
    %367 = vector.extract_strided_slice %352 {offsets = [0, 96], sizes = [8, 32], strides = [1, 1]} : vector<8x128xf32> to vector<8x32xf32>
    %368 = arith.negf %367 : vector<8x32xf32>
    %369 = math.exp %368 : vector<8x32xf32>
    %cst_113 = arith.constant 1.000000e+00 : f32
    %370 = vector.broadcast %cst_113 : f32 to vector<8x32xf32>
    %371 = arith.addf %370, %369 : vector<8x32xf32>
    %372 = arith.divf %370, %371 : vector<8x32xf32>
    %373 = arith.mulf %364, %340 : vector<8x32xf32>
    %374 = arith.mulf %358, %366 : vector<8x32xf32>
    %375 = arith.addf %373, %374 : vector<8x32xf32>
    %376 = math.tanh %375 : vector<8x32xf32>
    %377 = arith.mulf %372, %376 : vector<8x32xf32>
    %378 = arith.index_cast %c1_i32_107 : i32 to index
    %c0_114 = arith.constant 0 : index
    %c0_115 = arith.constant 0 : index
    %379 = vector.load %arg8[%378, %c0_114, %c0_115] : memref<8x8x32xf32, #tpu.memory_space<vmem>>, vector<1x8x32xf32>
    %380 = vector.shape_cast %379 : vector<1x8x32xf32> to vector<8x32xf32>
    %381 = vector.shape_cast %377 : vector<8x32xf32> to vector<1x8x32xf32>
    tpu.vector_store %arg8[%378, %c0_114, %c0_115], %381 {strides = array<i32>} : memref<8x8x32xf32, #tpu.memory_space<vmem>>, vector<1x8x32xf32>,
    %c2_i32_116 = arith.constant 2 : i32
    %382 = arith.index_cast %c2_i32_116 : i32 to index
    %c0_117 = arith.constant 0 : index
    %c0_118 = arith.constant 0 : index
    %383 = vector.load %arg11[%382, %c0_117, %c0_118] : memref<8x8x128xf32, #tpu.memory_space<vmem>>, vector<1x8x128xf32>
    %384 = vector.shape_cast %383 : vector<1x8x128xf32> to vector<8x128xf32>
    %385 = arith.truncf %377 : vector<8x32xf32> to vector<8x32xbf16>
    %cst_119 = arith.constant dense<0.000000e+00> : vector<8x128xf32>
    %386 = tpu.matmul %385, %309, %cst_119 {dimension_numbers = #tpu.dot_dimension_numbers<[1], [0], [0], [1], [0, 0, 1, 1], [], []>} : vector<8x32xbf16>, vector<32x128xbf16>, vector<8x128xf32> -> vector<8x128xf32>
    %387 = arith.addf %384, %386 : vector<8x128xf32>
    %388 = vector.extract_strided_slice %387 {offsets = [0, 0], sizes = [8, 32], strides = [1, 1]} : vector<8x128xf32> to vector<8x32xf32>
    %389 = arith.negf %388 : vector<8x32xf32>
    %390 = math.exp %389 : vector<8x32xf32>
    %cst_120 = arith.constant 1.000000e+00 : f32
    %391 = vector.broadcast %cst_120 : f32 to vector<8x32xf32>
    %392 = arith.addf %391, %390 : vector<8x32xf32>
    %393 = arith.divf %391, %392 : vector<8x32xf32>
    %394 = vector.extract_strided_slice %387 {offsets = [0, 32], sizes = [8, 32], strides = [1, 1]} : vector<8x128xf32> to vector<8x32xf32>
    %395 = arith.negf %394 : vector<8x32xf32>
    %396 = math.exp %395 : vector<8x32xf32>
    %cst_121 = arith.constant 1.000000e+00 : f32
    %397 = vector.broadcast %cst_121 : f32 to vector<8x32xf32>
    %398 = arith.addf %397, %396 : vector<8x32xf32>
    %399 = arith.divf %397, %398 : vector<8x32xf32>
    %400 = vector.extract_strided_slice %387 {offsets = [0, 64], sizes = [8, 32], strides = [1, 1]} : vector<8x128xf32> to vector<8x32xf32>
    %401 = math.tanh %400 : vector<8x32xf32>
    %402 = vector.extract_strided_slice %387 {offsets = [0, 96], sizes = [8, 32], strides = [1, 1]} : vector<8x128xf32> to vector<8x32xf32>
    %403 = arith.negf %402 : vector<8x32xf32>
    %404 = math.exp %403 : vector<8x32xf32>
    %cst_122 = arith.constant 1.000000e+00 : f32
    %405 = vector.broadcast %cst_122 : f32 to vector<8x32xf32>
    %406 = arith.addf %405, %404 : vector<8x32xf32>
    %407 = arith.divf %405, %406 : vector<8x32xf32>
    %408 = arith.mulf %399, %375 : vector<8x32xf32>
    %409 = arith.mulf %393, %401 : vector<8x32xf32>
    %410 = arith.addf %408, %409 : vector<8x32xf32>
    %411 = math.tanh %410 : vector<8x32xf32>
    %412 = arith.mulf %407, %411 : vector<8x32xf32>
    %413 = arith.index_cast %c2_i32_116 : i32 to index
    %c0_123 = arith.constant 0 : index
    %c0_124 = arith.constant 0 : index
    %414 = vector.load %arg8[%413, %c0_123, %c0_124] : memref<8x8x32xf32, #tpu.memory_space<vmem>>, vector<1x8x32xf32>
    %415 = vector.shape_cast %414 : vector<1x8x32xf32> to vector<8x32xf32>
    %416 = vector.shape_cast %412 : vector<8x32xf32> to vector<1x8x32xf32>
    tpu.vector_store %arg8[%413, %c0_123, %c0_124], %416 {strides = array<i32>} : memref<8x8x32xf32, #tpu.memory_space<vmem>>, vector<1x8x32xf32>,
    %c3_i32_125 = arith.constant 3 : i32
    %417 = arith.index_cast %c3_i32_125 : i32 to index
    %c0_126 = arith.constant 0 : index
    %c0_127 = arith.constant 0 : index
    %418 = vector.load %arg11[%417, %c0_126, %c0_127] : memref<8x8x128xf32, #tpu.memory_space<vmem>>, vector<1x8x128xf32>
    %419 = vector.shape_cast %418 : vector<1x8x128xf32> to vector<8x128xf32>
    %420 = arith.truncf %412 : vector<8x32xf32> to vector<8x32xbf16>
    %cst_128 = arith.constant dense<0.000000e+00> : vector<8x128xf32>
    %421 = tpu.matmul %420, %309, %cst_128 {dimension_numbers = #tpu.dot_dimension_numbers<[1], [0], [0], [1], [0, 0, 1, 1], [], []>} : vector<8x32xbf16>, vector<32x128xbf16>, vector<8x128xf32> -> vector<8x128xf32>
    %422 = arith.addf %419, %421 : vector<8x128xf32>
    %423 = vector.extract_strided_slice %422 {offsets = [0, 0], sizes = [8, 32], strides = [1, 1]} : vector<8x128xf32> to vector<8x32xf32>
    %424 = arith.negf %423 : vector<8x32xf32>
    %425 = math.exp %424 : vector<8x32xf32>
    %cst_129 = arith.constant 1.000000e+00 : f32
    %426 = vector.broadcast %cst_129 : f32 to vector<8x32xf32>
    %427 = arith.addf %426, %425 : vector<8x32xf32>
    %428 = arith.divf %426, %427 : vector<8x32xf32>
    %429 = vector.extract_strided_slice %422 {offsets = [0, 32], sizes = [8, 32], strides = [1, 1]} : vector<8x128xf32> to vector<8x32xf32>
    %430 = arith.negf %429 : vector<8x32xf32>
    %431 = math.exp %430 : vector<8x32xf32>
    %cst_130 = arith.constant 1.000000e+00 : f32
    %432 = vector.broadcast %cst_130 : f32 to vector<8x32xf32>
    %433 = arith.addf %432, %431 : vector<8x32xf32>
    %434 = arith.divf %432, %433 : vector<8x32xf32>
    %435 = vector.extract_strided_slice %422 {offsets = [0, 64], sizes = [8, 32], strides = [1, 1]} : vector<8x128xf32> to vector<8x32xf32>
    %436 = math.tanh %435 : vector<8x32xf32>
    %437 = vector.extract_strided_slice %422 {offsets = [0, 96], sizes = [8, 32], strides = [1, 1]} : vector<8x128xf32> to vector<8x32xf32>
    %438 = arith.negf %437 : vector<8x32xf32>
    %439 = math.exp %438 : vector<8x32xf32>
    %cst_131 = arith.constant 1.000000e+00 : f32
    %440 = vector.broadcast %cst_131 : f32 to vector<8x32xf32>
    %441 = arith.addf %440, %439 : vector<8x32xf32>
    %442 = arith.divf %440, %441 : vector<8x32xf32>
    %443 = arith.mulf %434, %410 : vector<8x32xf32>
    %444 = arith.mulf %428, %436 : vector<8x32xf32>
    %445 = arith.addf %443, %444 : vector<8x32xf32>
    %446 = math.tanh %445 : vector<8x32xf32>
    %447 = arith.mulf %442, %446 : vector<8x32xf32>
    %448 = arith.index_cast %c3_i32_125 : i32 to index
    %c0_132 = arith.constant 0 : index
    %c0_133 = arith.constant 0 : index
    %449 = vector.load %arg8[%448, %c0_132, %c0_133] : memref<8x8x32xf32, #tpu.memory_space<vmem>>, vector<1x8x32xf32>
    %450 = vector.shape_cast %449 : vector<1x8x32xf32> to vector<8x32xf32>
    %451 = vector.shape_cast %447 : vector<8x32xf32> to vector<1x8x32xf32>
    tpu.vector_store %arg8[%448, %c0_132, %c0_133], %451 {strides = array<i32>} : memref<8x8x32xf32, #tpu.memory_space<vmem>>, vector<1x8x32xf32>,
    %c4_i32_134 = arith.constant 4 : i32
    %452 = arith.index_cast %c4_i32_134 : i32 to index
    %c0_135 = arith.constant 0 : index
    %c0_136 = arith.constant 0 : index
    %453 = vector.load %arg11[%452, %c0_135, %c0_136] : memref<8x8x128xf32, #tpu.memory_space<vmem>>, vector<1x8x128xf32>
    %454 = vector.shape_cast %453 : vector<1x8x128xf32> to vector<8x128xf32>
    %455 = arith.truncf %447 : vector<8x32xf32> to vector<8x32xbf16>
    %cst_137 = arith.constant dense<0.000000e+00> : vector<8x128xf32>
    %456 = tpu.matmul %455, %309, %cst_137 {dimension_numbers = #tpu.dot_dimension_numbers<[1], [0], [0], [1], [0, 0, 1, 1], [], []>} : vector<8x32xbf16>, vector<32x128xbf16>, vector<8x128xf32> -> vector<8x128xf32>
    %457 = arith.addf %454, %456 : vector<8x128xf32>
    %458 = vector.extract_strided_slice %457 {offsets = [0, 0], sizes = [8, 32], strides = [1, 1]} : vector<8x128xf32> to vector<8x32xf32>
    %459 = arith.negf %458 : vector<8x32xf32>
    %460 = math.exp %459 : vector<8x32xf32>
    %cst_138 = arith.constant 1.000000e+00 : f32
    %461 = vector.broadcast %cst_138 : f32 to vector<8x32xf32>
    %462 = arith.addf %461, %460 : vector<8x32xf32>
    %463 = arith.divf %461, %462 : vector<8x32xf32>
    %464 = vector.extract_strided_slice %457 {offsets = [0, 32], sizes = [8, 32], strides = [1, 1]} : vector<8x128xf32> to vector<8x32xf32>
    %465 = arith.negf %464 : vector<8x32xf32>
    %466 = math.exp %465 : vector<8x32xf32>
    %cst_139 = arith.constant 1.000000e+00 : f32
    %467 = vector.broadcast %cst_139 : f32 to vector<8x32xf32>
    %468 = arith.addf %467, %466 : vector<8x32xf32>
    %469 = arith.divf %467, %468 : vector<8x32xf32>
    %470 = vector.extract_strided_slice %457 {offsets = [0, 64], sizes = [8, 32], strides = [1, 1]} : vector<8x128xf32> to vector<8x32xf32>
    %471 = math.tanh %470 : vector<8x32xf32>
    %472 = vector.extract_strided_slice %457 {offsets = [0, 96], sizes = [8, 32], strides = [1, 1]} : vector<8x128xf32> to vector<8x32xf32>
    %473 = arith.negf %472 : vector<8x32xf32>
    %474 = math.exp %473 : vector<8x32xf32>
    %cst_140 = arith.constant 1.000000e+00 : f32
    %475 = vector.broadcast %cst_140 : f32 to vector<8x32xf32>
    %476 = arith.addf %475, %474 : vector<8x32xf32>
    %477 = arith.divf %475, %476 : vector<8x32xf32>
    %478 = arith.mulf %469, %445 : vector<8x32xf32>
    %479 = arith.mulf %463, %471 : vector<8x32xf32>
    %480 = arith.addf %478, %479 : vector<8x32xf32>
    %481 = math.tanh %480 : vector<8x32xf32>
    %482 = arith.mulf %477, %481 : vector<8x32xf32>
    %483 = arith.index_cast %c4_i32_134 : i32 to index
    %c0_141 = arith.constant 0 : index
    %c0_142 = arith.constant 0 : index
    %484 = vector.load %arg8[%483, %c0_141, %c0_142] : memref<8x8x32xf32, #tpu.memory_space<vmem>>, vector<1x8x32xf32>
    %485 = vector.shape_cast %484 : vector<1x8x32xf32> to vector<8x32xf32>
    %486 = vector.shape_cast %482 : vector<8x32xf32> to vector<1x8x32xf32>
    tpu.vector_store %arg8[%483, %c0_141, %c0_142], %486 {strides = array<i32>} : memref<8x8x32xf32, #tpu.memory_space<vmem>>, vector<1x8x32xf32>,
    %c5_i32_143 = arith.constant 5 : i32
    %487 = arith.index_cast %c5_i32_143 : i32 to index
    %c0_144 = arith.constant 0 : index
    %c0_145 = arith.constant 0 : index
    %488 = vector.load %arg11[%487, %c0_144, %c0_145] : memref<8x8x128xf32, #tpu.memory_space<vmem>>, vector<1x8x128xf32>
    %489 = vector.shape_cast %488 : vector<1x8x128xf32> to vector<8x128xf32>
    %490 = arith.truncf %482 : vector<8x32xf32> to vector<8x32xbf16>
    %cst_146 = arith.constant dense<0.000000e+00> : vector<8x128xf32>
    %491 = tpu.matmul %490, %309, %cst_146 {dimension_numbers = #tpu.dot_dimension_numbers<[1], [0], [0], [1], [0, 0, 1, 1], [], []>} : vector<8x32xbf16>, vector<32x128xbf16>, vector<8x128xf32> -> vector<8x128xf32>
    %492 = arith.addf %489, %491 : vector<8x128xf32>
    %493 = vector.extract_strided_slice %492 {offsets = [0, 0], sizes = [8, 32], strides = [1, 1]} : vector<8x128xf32> to vector<8x32xf32>
    %494 = arith.negf %493 : vector<8x32xf32>
    %495 = math.exp %494 : vector<8x32xf32>
    %cst_147 = arith.constant 1.000000e+00 : f32
    %496 = vector.broadcast %cst_147 : f32 to vector<8x32xf32>
    %497 = arith.addf %496, %495 : vector<8x32xf32>
    %498 = arith.divf %496, %497 : vector<8x32xf32>
    %499 = vector.extract_strided_slice %492 {offsets = [0, 32], sizes = [8, 32], strides = [1, 1]} : vector<8x128xf32> to vector<8x32xf32>
    %500 = arith.negf %499 : vector<8x32xf32>
    %501 = math.exp %500 : vector<8x32xf32>
    %cst_148 = arith.constant 1.000000e+00 : f32
    %502 = vector.broadcast %cst_148 : f32 to vector<8x32xf32>
    %503 = arith.addf %502, %501 : vector<8x32xf32>
    %504 = arith.divf %502, %503 : vector<8x32xf32>
    %505 = vector.extract_strided_slice %492 {offsets = [0, 64], sizes = [8, 32], strides = [1, 1]} : vector<8x128xf32> to vector<8x32xf32>
    %506 = math.tanh %505 : vector<8x32xf32>
    %507 = vector.extract_strided_slice %492 {offsets = [0, 96], sizes = [8, 32], strides = [1, 1]} : vector<8x128xf32> to vector<8x32xf32>
    %508 = arith.negf %507 : vector<8x32xf32>
    %509 = math.exp %508 : vector<8x32xf32>
    %cst_149 = arith.constant 1.000000e+00 : f32
    %510 = vector.broadcast %cst_149 : f32 to vector<8x32xf32>
    %511 = arith.addf %510, %509 : vector<8x32xf32>
    %512 = arith.divf %510, %511 : vector<8x32xf32>
    %513 = arith.mulf %504, %480 : vector<8x32xf32>
    %514 = arith.mulf %498, %506 : vector<8x32xf32>
    %515 = arith.addf %513, %514 : vector<8x32xf32>
    %516 = math.tanh %515 : vector<8x32xf32>
    %517 = arith.mulf %512, %516 : vector<8x32xf32>
    %518 = arith.index_cast %c5_i32_143 : i32 to index
    %c0_150 = arith.constant 0 : index
    %c0_151 = arith.constant 0 : index
    %519 = vector.load %arg8[%518, %c0_150, %c0_151] : memref<8x8x32xf32, #tpu.memory_space<vmem>>, vector<1x8x32xf32>
    %520 = vector.shape_cast %519 : vector<1x8x32xf32> to vector<8x32xf32>
    %521 = vector.shape_cast %517 : vector<8x32xf32> to vector<1x8x32xf32>
    tpu.vector_store %arg8[%518, %c0_150, %c0_151], %521 {strides = array<i32>} : memref<8x8x32xf32, #tpu.memory_space<vmem>>, vector<1x8x32xf32>,
    %c6_i32_152 = arith.constant 6 : i32
    %522 = arith.index_cast %c6_i32_152 : i32 to index
    %c0_153 = arith.constant 0 : index
    %c0_154 = arith.constant 0 : index
    %523 = vector.load %arg11[%522, %c0_153, %c0_154] : memref<8x8x128xf32, #tpu.memory_space<vmem>>, vector<1x8x128xf32>
    %524 = vector.shape_cast %523 : vector<1x8x128xf32> to vector<8x128xf32>
    %525 = arith.truncf %517 : vector<8x32xf32> to vector<8x32xbf16>
    %cst_155 = arith.constant dense<0.000000e+00> : vector<8x128xf32>
    %526 = tpu.matmul %525, %309, %cst_155 {dimension_numbers = #tpu.dot_dimension_numbers<[1], [0], [0], [1], [0, 0, 1, 1], [], []>} : vector<8x32xbf16>, vector<32x128xbf16>, vector<8x128xf32> -> vector<8x128xf32>
    %527 = arith.addf %524, %526 : vector<8x128xf32>
    %528 = vector.extract_strided_slice %527 {offsets = [0, 0], sizes = [8, 32], strides = [1, 1]} : vector<8x128xf32> to vector<8x32xf32>
    %529 = arith.negf %528 : vector<8x32xf32>
    %530 = math.exp %529 : vector<8x32xf32>
    %cst_156 = arith.constant 1.000000e+00 : f32
    %531 = vector.broadcast %cst_156 : f32 to vector<8x32xf32>
    %532 = arith.addf %531, %530 : vector<8x32xf32>
    %533 = arith.divf %531, %532 : vector<8x32xf32>
    %534 = vector.extract_strided_slice %527 {offsets = [0, 32], sizes = [8, 32], strides = [1, 1]} : vector<8x128xf32> to vector<8x32xf32>
    %535 = arith.negf %534 : vector<8x32xf32>
    %536 = math.exp %535 : vector<8x32xf32>
    %cst_157 = arith.constant 1.000000e+00 : f32
    %537 = vector.broadcast %cst_157 : f32 to vector<8x32xf32>
    %538 = arith.addf %537, %536 : vector<8x32xf32>
    %539 = arith.divf %537, %538 : vector<8x32xf32>
    %540 = vector.extract_strided_slice %527 {offsets = [0, 64], sizes = [8, 32], strides = [1, 1]} : vector<8x128xf32> to vector<8x32xf32>
    %541 = math.tanh %540 : vector<8x32xf32>
    %542 = vector.extract_strided_slice %527 {offsets = [0, 96], sizes = [8, 32], strides = [1, 1]} : vector<8x128xf32> to vector<8x32xf32>
    %543 = arith.negf %542 : vector<8x32xf32>
    %544 = math.exp %543 : vector<8x32xf32>
    %cst_158 = arith.constant 1.000000e+00 : f32
    %545 = vector.broadcast %cst_158 : f32 to vector<8x32xf32>
    %546 = arith.addf %545, %544 : vector<8x32xf32>
    %547 = arith.divf %545, %546 : vector<8x32xf32>
    %548 = arith.mulf %539, %515 : vector<8x32xf32>
    %549 = arith.mulf %533, %541 : vector<8x32xf32>
    %550 = arith.addf %548, %549 : vector<8x32xf32>
    %551 = math.tanh %550 : vector<8x32xf32>
    %552 = arith.mulf %547, %551 : vector<8x32xf32>
    %553 = arith.index_cast %c6_i32_152 : i32 to index
    %c0_159 = arith.constant 0 : index
    %c0_160 = arith.constant 0 : index
    %554 = vector.load %arg8[%553, %c0_159, %c0_160] : memref<8x8x32xf32, #tpu.memory_space<vmem>>, vector<1x8x32xf32>
    %555 = vector.shape_cast %554 : vector<1x8x32xf32> to vector<8x32xf32>
    %556 = vector.shape_cast %552 : vector<8x32xf32> to vector<1x8x32xf32>
    tpu.vector_store %arg8[%553, %c0_159, %c0_160], %556 {strides = array<i32>} : memref<8x8x32xf32, #tpu.memory_space<vmem>>, vector<1x8x32xf32>,
    %c7_i32_161 = arith.constant 7 : i32
    %557 = arith.index_cast %c7_i32_161 : i32 to index
    %c0_162 = arith.constant 0 : index
    %c0_163 = arith.constant 0 : index
    %558 = vector.load %arg11[%557, %c0_162, %c0_163] : memref<8x8x128xf32, #tpu.memory_space<vmem>>, vector<1x8x128xf32>
    %559 = vector.shape_cast %558 : vector<1x8x128xf32> to vector<8x128xf32>
    %560 = arith.truncf %552 : vector<8x32xf32> to vector<8x32xbf16>
    %cst_164 = arith.constant dense<0.000000e+00> : vector<8x128xf32>
    %561 = tpu.matmul %560, %309, %cst_164 {dimension_numbers = #tpu.dot_dimension_numbers<[1], [0], [0], [1], [0, 0, 1, 1], [], []>} : vector<8x32xbf16>, vector<32x128xbf16>, vector<8x128xf32> -> vector<8x128xf32>
    %562 = arith.addf %559, %561 : vector<8x128xf32>
    %563 = vector.extract_strided_slice %562 {offsets = [0, 0], sizes = [8, 32], strides = [1, 1]} : vector<8x128xf32> to vector<8x32xf32>
    %564 = arith.negf %563 : vector<8x32xf32>
    %565 = math.exp %564 : vector<8x32xf32>
    %cst_165 = arith.constant 1.000000e+00 : f32
    %566 = vector.broadcast %cst_165 : f32 to vector<8x32xf32>
    %567 = arith.addf %566, %565 : vector<8x32xf32>
    %568 = arith.divf %566, %567 : vector<8x32xf32>
    %569 = vector.extract_strided_slice %562 {offsets = [0, 32], sizes = [8, 32], strides = [1, 1]} : vector<8x128xf32> to vector<8x32xf32>
    %570 = arith.negf %569 : vector<8x32xf32>
    %571 = math.exp %570 : vector<8x32xf32>
    %cst_166 = arith.constant 1.000000e+00 : f32
    %572 = vector.broadcast %cst_166 : f32 to vector<8x32xf32>
    %573 = arith.addf %572, %571 : vector<8x32xf32>
    %574 = arith.divf %572, %573 : vector<8x32xf32>
    %575 = vector.extract_strided_slice %562 {offsets = [0, 64], sizes = [8, 32], strides = [1, 1]} : vector<8x128xf32> to vector<8x32xf32>
    %576 = math.tanh %575 : vector<8x32xf32>
    %577 = vector.extract_strided_slice %562 {offsets = [0, 96], sizes = [8, 32], strides = [1, 1]} : vector<8x128xf32> to vector<8x32xf32>
    %578 = arith.negf %577 : vector<8x32xf32>
    %579 = math.exp %578 : vector<8x32xf32>
    %cst_167 = arith.constant 1.000000e+00 : f32
    %580 = vector.broadcast %cst_167 : f32 to vector<8x32xf32>
    %581 = arith.addf %580, %579 : vector<8x32xf32>
    %582 = arith.divf %580, %581 : vector<8x32xf32>
    %583 = arith.mulf %574, %550 : vector<8x32xf32>
    %584 = arith.mulf %568, %576 : vector<8x32xf32>
    %585 = arith.addf %583, %584 : vector<8x32xf32>
    %586 = math.tanh %585 : vector<8x32xf32>
    %587 = arith.mulf %582, %586 : vector<8x32xf32>
    %588 = arith.index_cast %c7_i32_161 : i32 to index
    %c0_168 = arith.constant 0 : index
    %c0_169 = arith.constant 0 : index
    %589 = vector.load %arg8[%588, %c0_168, %c0_169] : memref<8x8x32xf32, #tpu.memory_space<vmem>>, vector<1x8x32xf32>
    %590 = vector.shape_cast %589 : vector<1x8x32xf32> to vector<8x32xf32>
    %591 = vector.shape_cast %587 : vector<8x32xf32> to vector<1x8x32xf32>
    tpu.vector_store %arg8[%588, %c0_168, %c0_169], %591 {strides = array<i32>} : memref<8x8x32xf32, #tpu.memory_space<vmem>>, vector<1x8x32xf32>,
    %c8_i32_170 = arith.constant 8 : i32
    %c1 = arith.constant 1 : index
    %c0_171 = arith.constant 0 : index
    %c0_172 = arith.constant 0 : index
    %592 = vector.load %arg9[%c1, %c0_171, %c0_172] : memref<2x8x32xf32, #tpu.memory_space<vmem>>, vector<1x8x32xf32>
    %593 = vector.shape_cast %592 : vector<1x8x32xf32> to vector<8x32xf32>
    %594 = vector.shape_cast %587 : vector<8x32xf32> to vector<1x8x32xf32>
    tpu.vector_store %arg9[%c1, %c0_171, %c0_172], %594 {strides = array<i32>} : memref<2x8x32xf32, #tpu.memory_space<vmem>>, vector<1x8x32xf32>,
    %c1_173 = arith.constant 1 : index
    %c0_174 = arith.constant 0 : index
    %c0_175 = arith.constant 0 : index
    %595 = vector.load %arg10[%c1_173, %c0_174, %c0_175] : memref<2x8x32xf32, #tpu.memory_space<vmem>>, vector<1x8x32xf32>
    %596 = vector.shape_cast %595 : vector<1x8x32xf32> to vector<8x32xf32>
    %597 = vector.shape_cast %585 : vector<8x32xf32> to vector<1x8x32xf32>
    tpu.vector_store %arg10[%c1_173, %c0_174, %c0_175], %597 {strides = array<i32>} : memref<2x8x32xf32, #tpu.memory_space<vmem>>, vector<1x8x32xf32>,
    return
  }
  func.func @transform_0(%arg0: i32) -> (i32, i32, i32) {
    %c0_i32 = arith.constant 0 : i32
    %c0_i32_0 = arith.constant 0 : i32
    %c0_i32_1 = arith.constant 0 : i32
    return %c0_i32, %arg0, %c0_i32_0 : i32, i32, i32
  }
  func.func @transform_1(%arg0: i32) -> (i32, i32) {
    %c0_i32 = arith.constant 0 : i32
    %c0_i32_0 = arith.constant 0 : i32
    %c0_i32_1 = arith.constant 0 : i32
    return %c0_i32, %c0_i32_0 : i32, i32
  }
  func.func @transform_2(%arg0: i32) -> (i32, i32) {
    %c0_i32 = arith.constant 0 : i32
    %c0_i32_0 = arith.constant 0 : i32
    %c0_i32_1 = arith.constant 0 : i32
    return %c0_i32, %c0_i32_0 : i32, i32
  }
  func.func @transform_3(%arg0: i32) -> (i32, i32) {
    %c0_i32 = arith.constant 0 : i32
    %c0_i32_0 = arith.constant 0 : i32
    %c0_i32_1 = arith.constant 0 : i32
    return %c0_i32, %c0_i32_0 : i32, i32
  }
  func.func @transform_4(%arg0: i32) -> (i32, i32) {
    %c0_i32 = arith.constant 0 : i32
    %c0_i32_0 = arith.constant 0 : i32
    %c0_i32_1 = arith.constant 0 : i32
    return %c0_i32, %c0_i32_0 : i32, i32
  }
  func.func @transform_5(%arg0: i32) -> (i32, i32) {
    %c0_i32 = arith.constant 0 : i32
    %c0_i32_0 = arith.constant 0 : i32
    %c0_i32_1 = arith.constant 0 : i32
    return %c0_i32, %c0_i32_0 : i32, i32
  }
  func.func @transform_6(%arg0: i32) -> (i32, i32) {
    %c0_i32 = arith.constant 0 : i32
    %c0_i32_0 = arith.constant 0 : i32
    %c0_i32_1 = arith.constant 0 : i32
    return %c0_i32, %c0_i32_0 : i32, i32
  }
  func.func @transform_7(%arg0: i32) -> (i32, i32, i32) {
    %c0_i32 = arith.constant 0 : i32
    %c0_i32_0 = arith.constant 0 : i32
    %c0_i32_1 = arith.constant 0 : i32
    return %c0_i32, %arg0, %c0_i32_0 : i32, i32, i32
  }
  func.func @transform_8(%arg0: i32) -> (i32, i32, i32) {
    %c0_i32 = arith.constant 0 : i32
    %c0_i32_0 = arith.constant 0 : i32
    %c0_i32_1 = arith.constant 0 : i32
    return %c0_i32, %arg0, %c0_i32_0 : i32, i32, i32
  }
  func.func @transform_9(%arg0: i32) -> (i32, i32, i32) {
    %c0_i32 = arith.constant 0 : i32
    %c0_i32_0 = arith.constant 0 : i32
    %c0_i32_1 = arith.constant 0 : i32
    return %c0_i32, %arg0, %c0_i32_0 : i32, i32, i32
  }
}

</mosaic_0001>

<bundles_post_ra>
// kernel: tpu_custom_call.1
= control target key start
LH: loop header
LB: loop body
LE: loop exit
PB: predicated region body
PF: predicated region fallthrough
CT: control target
= control target key end

     0   :  { %15 = vsyncpa [#allocation4], 0  ;;  %s2801_s0 = inlined_call_operand.hbm [shape: f32[8,8,16], index: 0, kind: input, shape index: {}]   ;;  %s2802_s1 = inlined_call_operand.hbm [shape: bf16[16,128], index: 1, kind: input, shape index: {}]   ;;  %s2803_s2 = inlined_call_operand.hbm [shape: bf16[32,128], index: 2, kind: input, shape index: {}]   ;;  %s2804_s3 = inlined_call_operand.vmem [shape: f32[1,128], index: 3, kind: input, shape index: {}]   ;;  %s2805_s4 = inlined_call_operand.hbm [shape: bf16[32,128], index: 4, kind: input, shape index: {}]   ;;  %s2806_s5 = inlined_call_operand.vmem [shape: bf16[32,128], index: 5, kind: input, shape index: {}]   ;;  %s2807_s6 = inlined_call_operand.vmem [shape: f32[1,128], index: 6, kind: input, shape index: {}]   ;;  %s2808_s7 = inlined_call_operand.hbm [shape: f32[8,8,32], index: 7, kind: output, shape index: {0}]   ;;  %s2809_s8 = inlined_call_operand.hbm [shape: f32[2,8,32], index: 8, kind: output, shape index: {1}]   ;;  %s2810_s9 = inlined_call_operand.hbm [shape: f32[2,8,32], index: 9, kind: output, shape index: {2}]  }
   0x1   :  { %16 = vsyncpa [#allocation7], 0 }
   0x2   :  { %17 = vsyncpa [#allocation10], 0 }
   0x3   :  { %18 = vsyncpa [#allocation5], 0 }
   0x4   :  { %19 = vsyncpa [#allocation13], 0  ;;  %s2239_s30 = smov [#allocation6]   ;;  %s2075_s13 = scalar_lea.hbm %s2802_s1, 128 }
   0x5   :  { %s37_s10 = sshll.u32 %s2239_s30, 4  ;;  %p2076_p0 = scmp.ne.s32.totalorder %s2802_s1, %s2075_s13  ;;  %s38_s10 = int_to_ptr.vmem [resolvable:$true] %s37_s10 }
   0x6   :  { %p2079_p1 = scmp.lt.u32.totalorder %s2075_s13, %s2802_s1 }
   0x8   :  { %p2081_p2 = pnand %p2079_p1, %p2076_p0 }
   0xa   :  { %2084 = shalt.err (!%p2081_p2)
}
   0xb   :  { %s2085_s18 = scalar_lea.vmem %s38_s10, 128  ;;  %p2090_p4 = scmp.lt.s32.totalorder %s38_s10, %s38_s10 }
   0xc   :  { %p2086_p3 = scmp.ne.s32.totalorder %s38_s10, %s2085_s18  ;;  %p2091_p5 = scmp.lt.s32.totalorder %s2085_s18, %s2085_s18 }
   0xe   :  { %p2092_p6 = por %p2091_p5, %p2090_p4 }
  0x10   :  { %p2093_p7 = pnand %p2092_p6, %p2086_p3 }
  0x12   :  { %2096 = shalt.err (!%p2093_p7)
}
  0x13   :  { %s2240_s19 = smov 64   ;;  %s2241_s20 = smov 4  }
  0x14   :  { %43 = dma.hbm_to_vmem [thread:$0]  %s2802_s1, 128, %s38_s10, [#allocation7], %s2240_s19, %s2240_s19, %s2241_s20  }
  0x15   :  { %s2242_s23 = smov [#allocation3]   ;;  %s2097_s27 = scalar_lea.hbm %s2801_s0, 1024 }
  0x16   :  { %s25_s24 = sshll.u32 %s2242_s23, 4  ;;  %p2098_p8 = scmp.ne.s32.totalorder %s2801_s0, %s2097_s27  ;;  %s26_s24 = int_to_ptr.vmem [resolvable:$true] %s25_s24 }
  0x17   :  { %p2101_p9 = scmp.lt.u32.totalorder %s2097_s27, %s2801_s0 }
  0x19   :  { %p2103_p10 = pnand %p2101_p9, %p2098_p8 }
  0x1b   :  { %2106 = shalt.err (!%p2103_p10)
}
  0x1c   :  { %s2107_s12 = scalar_lea.vmem %s26_s24, 1024  ;;  %p2112_p12 = scmp.lt.s32.totalorder %s26_s24, %s26_s24 }
  0x1d   :  { %p2108_p11 = scmp.ne.s32.totalorder %s26_s24, %s2107_s12  ;;  %p2113_p13 = scmp.lt.s32.totalorder %s2107_s12, %s2107_s12 }
  0x1f   :  { %p2114_p0 = por %p2113_p13, %p2112_p12 }
  0x21   :  { %p2115_p1 = pnand %p2114_p0, %p2108_p11 }
  0x23   :  { %2118 = shalt.err (!%p2115_p1)
}
  0x24   :  { %s2243_s1 = smov 128   ;;  %s2244_s10 = smov 8  }
  0x25   :  { %31 = dma.hbm_to_vmem [thread:$0]  %s2801_s0, 1024, %s26_s24, [#allocation4], %s2243_s1, %s2243_s1, %s2244_s10  }
  0x26   :  { %s2245_s15 = smov [#allocation8]   ;;  %s2246_s17 = smov [#allocation9]  }
  0x27   :  { %s49_s16 = sshll.u32 %s2245_s15, 4  ;;  %s63_s18 = sshll.u32 %s2246_s17, 4  ;;  %s50_s16 = int_to_ptr.vmem [resolvable:$true] %s49_s16  ;;  %s2335_s18 = int_to_ptr.vmem [resolvable:$true] %s63_s18 }
  0x28   :  { %s2119_s23 = scalar_lea.hbm %s2803_s2, 256 }
  0x29   :  { %p2120_p2 = scmp.ne.s32.totalorder %s2803_s2, %s2119_s23  ;;  %p2123_p3 = scmp.lt.u32.totalorder %s2119_s23, %s2803_s2 }
  0x2b   :  { %p2125_p4 = pnand %p2123_p3, %p2120_p2 }
  0x2d   :  { %2128 = shalt.err (!%p2125_p4)
}
  0x2e   :  { %s2129_s0 = scalar_lea.vmem %s50_s16, 256  ;;  %p2134_p6 = scmp.lt.s32.totalorder %s50_s16, %s50_s16 }
  0x2f   :  { %p2130_p5 = scmp.ne.s32.totalorder %s50_s16, %s2129_s0  ;;  %p2135_p7 = scmp.lt.s32.totalorder %s2129_s0, %s2129_s0 }
  0x31   :  { %p2136_p8 = por %p2135_p7, %p2134_p6 }
  0x33   :  { %p2137_p9 = pnand %p2136_p8, %p2130_p5 }
  0x35   :  { %2140 = shalt.err (!%p2137_p9)
}
  0x36   :  { %55 = dma.hbm_to_vmem [thread:$0]  %s2803_s2, 256, %s50_s16, [#allocation7], %s2240_s19, %s2240_s19, %s2241_s20  }
  0x37   :  { %s2141_s12 = scalar_lea.hbm %s2805_s4, 256 }
  0x38   :  { %p2142_p10 = scmp.ne.s32.totalorder %s2805_s4, %s2141_s12  ;;  %p2145_p11 = scmp.lt.u32.totalorder %s2141_s12, %s2805_s4 }
  0x3a   :  { %p2147_p12 = pnand %p2145_p11, %p2142_p10 }
  0x3c   :  { %2150 = shalt.err (!%p2147_p12)
}
  0x3d   :  { %s2151_s21 = scalar_lea.vmem %s2335_s18, 256  ;;  %p2156_p0 = scmp.lt.s32.totalorder %s2335_s18, %s2335_s18 }
  0x3e   :  { %p2152_p13 = scmp.ne.s32.totalorder %s2335_s18, %s2151_s21  ;;  %p2157_p1 = scmp.lt.s32.totalorder %s2151_s21, %s2151_s21 }
  0x40   :  { %p2158_p2 = por %p2157_p1, %p2156_p0 }
  0x42   :  { %p2159_p3 = pnand %p2158_p2, %p2152_p13 }
  0x44   :  { %2162 = shalt.err (!%p2159_p3)
}
  0x45   :  { %69 = dma.hbm_to_vmem [thread:$0]  %s2805_s4, 256, %s2335_s18, [#allocation10], %s2240_s19, %s2240_s19, %s2241_s20  }
  0x46   :  { %2229 = dma.done.wait [#allocation4], 1024  }
  0x47   :  { %2230 = vsyncadd [#allocation4], 4294966272 }
  0x48   :  { %2231 = dma.done.wait [#allocation7], 384  }
  0x49   :  { %2232 = vsyncadd [#allocation7], 4294966912 }
  0x4a   :  { %2233 = dma.done.wait [#allocation10], 256  }
  0x4b   :  { %2234 = vsyncadd [#allocation10], 4294967040  ;;  %v2247_v0 = vmov 0.0   ;;  %vm2248_vm0 = vmmov 0   ;;  %v1940_v1 = vld [vmem:[#allocation6] sm:$0xff]   ;;  %v2375_v2 = vld [vmem:[#allocation8] sm:$0xff]  }
  0x4c   :  { %1784 = vmatprep.subr.bf16.mxu1 %v2247_v0  ;;  %1788 = vmatprep.mubr.msk.bf16.mxu1 %vm2248_vm0, %v2247_v0  ;;  %v87_v3 = vld [vmem:[#allocation3] sm:$0xff]  ;;  %v88_v4 = vld [vmem:[#allocation3 + $0x8] sm:$0xff]  ;;  %vm114_vm1 = vcmask 130048   ;;  %v89_v5 = vld [vmem:[#allocation3 + $0x10] sm:$0xff]  ;;  %v2249_v10 = vmov 0   ;;  %vm217_vm2 = vcmask 261120  }
  0x4d   :  { %1774 = vmatprep.subr.bf16.mxu0 %v1940_v1  ;;  %1785 = vmatpush3.bf16.msra.mxu1 %v2375_v2  ;;  %v95_v6 = vpack.c.bf16 %v88_v4, %v87_v3  ;;  %v90_v7 = vld [vmem:[#allocation3 + $0x18] sm:$0xff]  ;;  %v2379_v9 = vld [vmem:[#allocation8 + $0x8] sm:$0xff]   ;;  %v2400_v11 = vld [vmem:[%s2804_s3] ss:$0 sm:$0xff]  ;;  %s2250_s3 = smov 32   ;;  %s2253_s28 = smov [#allocation14]  }
  0x4e   :  { %1775 = vmatpush3.bf16.msra.mxu0 %v1940_v1  ;;  %1786 = vmatprep.subr.bf16.mxu1 %v2247_v0  ;;  %v96_v8 = vpack.c.bf16 %v90_v7, %v89_v5  ;;  %v91_v53 = vld [vmem:[#allocation3 + $0x20] sm:$0xff]  ;;  %v92_v54 = vld [vmem:[#allocation3 + $0x28] sm:$0xff]  ;;  %v93_v55 = vld [vmem:[#allocation3 + $0x30] sm:$0xff]  ;;  %s1647_s0 = sshll.u32 %s2253_s28, 4  ;;  %s2254_s24 = smov [#allocation11]   ;;  %s2739_s0 = int_to_ptr.vmem [resolvable:$true] %s1647_s0 }
  0x4f   :  { %1800 = vmatprep.subr.bf16.mxu0 %v2247_v0  ;;  %1776 = vmatprep.mubr.msk.bf16.mxu0 %vm114_vm1, %v95_v6  ;;  %v97_v56 = vpack.c.bf16 %v92_v54, %v91_v53  ;;  %v94_v57 = vld [vmem:[#allocation3 + $0x38] sm:$0xff]  ;;  %s1623_s29 = sshll.u32 %s2254_s24, 4  ;;  %s2743_s29 = int_to_ptr.vmem [resolvable:$true] %s1623_s29 }
  0x50   :  { %v98_v58 = vpack.c.bf16 %v94_v57, %v93_v55 }
  0x51   :  { %1777 = vmatmul.mubr.msk.bf16.vlgmr.msra.gmra.mrb[0].mxu0 %vm114_vm1, %v96_v8  ;;  %1787 = vmatpush3.bf16.msra.mxu1 %v2379_v9 }
  0x52   :  { %1801 = vmatpush3.bf16.msra.mxu0 %v2375_v2  ;;  %1792 = vmatprep.subr.bf16.mxu1 %v2247_v0 }
  0x53   :  { %1802 = vmatprep.subr.bf16.mxu0 %v2247_v0  ;;  %1780 = vmatprep.mubr.msk.bf16.mxu0 %vm114_vm1, %v97_v56 }
  0x54   :  { %1789 = vmatmul.mubr.bf16.vlgmr.msra.gmra.mrb[0].mxu1 %v2249_v10 }
  0x55   :  { %1793 = vmatpush3.bf16.msra.mxu1 %v2375_v2  ;;  %1796 = vmatprep.mubr.msk.bf16.mxu1 %vm2248_vm0, %v2247_v0 }
  0x56   :  { %1794 = vmatprep.subr.bf16.mxu1 %v2247_v0  ;;  %1803 = vmatpush3.bf16.msra.mxu0 %v2379_v9 }
  0x57   :  { %1816 = vmatprep.subr.bf16.mxu0 %v2247_v0 }
  0x59   :  { %1795 = vmatpush3.bf16.msra.mxu1 %v2379_v9  ;;  %1781 = vmatmul.mubr.msk.bf16.gmra.mrb[4].mxu0 %vm114_vm1, %v98_v58 }
  0x5a   :  { %1808 = vmatprep.subr.bf16.mxu1 %v2247_v0  ;;  %1804 = vmatprep.mubr.msk.bf16.mxu0 %vm2248_vm0, %v2247_v0 }
 0x124   :  { %v2402_v12 = vpop.f32.mrb[0].mxu0 }
 0x125   :  { %v161_v13 = vpop.f32.mrb[1].mxu0  ;;  %v170_v6 = vadd.f32 %v2402_v12, %v2400_v11 }
 0x126   :  { %v162_v14 = vadd.f32 %v2400_v11, %v161_v13  ;;  %v2405_v15 = vpop.f32.mrb[2].mxu0 }
 0x127   :  { %v164_v16 = vpop.f32.mrb[3].mxu0  ;;  %v255_v17 = vpop.f32.mrb[0].mxu1 }
 0x128   :  { %v261_v18 = vadd.f32 %v255_v17, %v162_v14  ;;  %v1790_v19 = vpop.f32.mrb[1].mxu1  ;;  %v165_v37 = vadd.f32 %v2400_v11, %v164_v16 }
 0x129   :  { %v258_v20 = vpop.f32.mrb[2].mxu1 }
 0x12a   :  { %v1791_v21 = vpop.f32.mrb[3].mxu1  ;;  %1947 = vtanh.f32 %v261_v18  ;;  %v1676_v23 = vmul.f32 -1.442695, %v261_v18 }
 0x12c   :  { %1949 = vpow2.f32 %v1676_v23  ;;  %v2435_v63 = vpop.f32.mrb[4].mxu0 }
 0x12d   :  { %v2437_v1 = vpop.f32.mrb[5].mxu0 }
 0x12e   :  { %v2439_v3 = vpop.f32.mrb[6].mxu0 }
 0x12f   :  { %v2441_v4 = vpop.f32.mrb[7].mxu0 }
 0x134   :  { %v1948_v22 = vpop.eup %1947 }
 0x135   :  { %271 = vrot.lane.b32.xlu0 %v1948_v22, %s2240_s19 }
 0x136   :  { %v1950_v24 = vpop.eup %1949 }
 0x137   :  { %v265_v25 = vadd.f32 1.0, %v1950_v24 }
 0x139   :  { %1951 = vrcp.f32 %v265_v25 }
 0x143   :  { %v1952_v26 = vpop.eup %1951 }
 0x144   :  { %v269_v29 = vmul.f32 0.0, %v1952_v26 }
 0x1a7   :  { %v272_v27 = vpop.permute.xlu0 %271 }
 0x1a8   :  { %v274_v28 = vmul.f32 %v1952_v26, %v272_v27 }
 0x1aa   :  { %276 = vrot.lane.b32.xlu0 %v274_v28, %s2250_s3 }
 0x21c   :  { %v277_v30 = vpop.permute.xlu0 %276 }
 0x21d   :  { %v279_v31 = vadd.f32 %v277_v30, %v269_v29 }
 0x21f   :  { %1953 = vtanh.f32 %v279_v31 }
 0x229   :  { %v1954_v32 = vpop.eup %1953 }
 0x22a   :  { %282 = vrot.lane.b32.xlu1 %v1954_v32, %s2240_s19 }
 0x29c   :  { %v283_v33 = vpop.permute.xlu1 %282 }
 0x29d   :  { %v2410_v34 = vmul.f32 %v1952_v26, %v283_v33 }
 0x29f   :  { %v293_v35 = vpack.c.bf16 %v2410_v34, %v2410_v34 }
 0x2a1   :  { %295 = vrot.lane.b32.xlu1 %v293_v35, %s2250_s3 }
 0x313   :  { %v296_v36 = vpop.permute.xlu1 %295 }
 0x314   :  { %1797 = vmatmul.mubr.msk.bf16.vlgmr.msra.gmra.mrb[4].mxu1 %vm217_vm2, %v296_v36 }
 0x315   :  { %1809 = vmatpush3.bf16.msra.mxu1 %v2375_v2  ;;  %1812 = vmatprep.mubr.msk.bf16.mxu1 %vm2248_vm0, %v2247_v0 }
 0x316   :  { %1810 = vmatprep.subr.bf16.mxu1 %v2247_v0 }
 0x319   :  { %1811 = vmatpush3.bf16.msra.mxu1 %v2379_v9 }
 0x31a   :  { %1824 = vmatprep.subr.bf16.mxu1 %v2247_v0 }
 0x3e7   :  { %v334_v38 = vpop.f32.mrb[4].mxu1 }
 0x3e8   :  { %v340_v39 = vadd.f32 %v334_v38, %v165_v37  ;;  %v1798_v40 = vpop.f32.mrb[5].mxu1 }
 0x3e9   :  { %v337_v41 = vpop.f32.mrb[6].mxu1 }
 0x3ea   :  { %1955 = vtanh.f32 %v340_v39  ;;  %v1799_v42 = vpop.f32.mrb[7].mxu1  ;;  %v1678_v44 = vmul.f32 -1.442695, %v340_v39 }
 0x3ec   :  { %1957 = vpow2.f32 %v1678_v44 }
 0x3f4   :  { %v1956_v43 = vpop.eup %1955 }
 0x3f5   :  { %350 = vrot.lane.b32.xlu0 %v1956_v43, %s2240_s19 }
 0x3f6   :  { %v1958_v45 = vpop.eup %1957 }
 0x3f7   :  { %v344_v46 = vadd.f32 1.0, %v1958_v45 }
 0x3f9   :  { %1959 = vrcp.f32 %v344_v46 }
 0x403   :  { %v1960_v47 = vpop.eup %1959 }
 0x404   :  { %v348_v50 = vmul.f32 %v1960_v47, %v279_v31  ;;  %v173_v31 = vadd.f32 %v2405_v15, %v2400_v11 }
 0x467   :  { %v351_v48 = vpop.permute.xlu0 %350 }
 0x468   :  { %v353_v49 = vmul.f32 %v1960_v47, %v351_v48 }
 0x46a   :  { %355 = vrot.lane.b32.xlu1 %v353_v49, %s2250_s3 }
 0x4dc   :  { %v356_v51 = vpop.permute.xlu1 %355 }
 0x4dd   :  { %v358_v52 = vadd.f32 %v356_v51, %v348_v50 }
 0x4df   :  { %1961 = vtanh.f32 %v358_v52 }
 0x4e9   :  { %v1962_v59 = vpop.eup %1961 }
 0x4ea   :  { %361 = vrot.lane.b32.xlu0 %v1962_v59, %s2240_s19 }
 0x55c   :  { %v362_v60 = vpop.permute.xlu0 %361 }
 0x55d   :  { %v2430_v61 = vmul.f32 %v1960_v47, %v362_v60 }
 0x55f   :  { %v373_v62 = vpack.c.bf16 %v2430_v61, %v2430_v61 }
 0x561   :  { %375 = vrot.lane.b32.xlu1 %v373_v62, %s2250_s3 }
 0x5d3   :  { %v376_v5 = vpop.permute.xlu1 %375 }
 0x5d4   :  { %1805 = vmatmul.mubr.msk.bf16.vlgmr.msra.gmra.mrb[8].mxu0 %vm217_vm2, %v376_v5 }
 0x5d5   :  { %1817 = vmatpush3.bf16.msra.mxu0 %v2375_v2  ;;  %1820 = vmatprep.mubr.msk.bf16.mxu0 %vm2248_vm0, %v2247_v0 }
 0x5d6   :  { %1818 = vmatprep.subr.bf16.mxu0 %v2247_v0 }
 0x5d9   :  { %1819 = vmatpush3.bf16.msra.mxu0 %v2379_v9 }
 0x5da   :  { %1832 = vmatprep.subr.bf16.mxu0 %v2247_v0 }
 0x6a7   :  { %v414_v7 = vpop.f32.mrb[8].mxu0 }
 0x6a8   :  { %v420_v8 = vadd.f32 %v414_v7, %v170_v6  ;;  %v1806_v13 = vpop.f32.mrb[9].mxu0 }
 0x6a9   :  { %v417_v14 = vpop.f32.mrb[10].mxu0 }
 0x6aa   :  { %1963 = vtanh.f32 %v420_v8  ;;  %v1807_v16 = vpop.f32.mrb[11].mxu0  ;;  %v1680_v18 = vmul.f32 -1.442695, %v420_v8 }
 0x6ac   :  { %1965 = vpow2.f32 %v1680_v18 }
 0x6b4   :  { %v1964_v17 = vpop.eup %1963 }
 0x6b5   :  { %430 = vrot.lane.b32.xlu0 %v1964_v17, %s2240_s19 }
 0x6b6   :  { %v1966_v19 = vpop.eup %1965 }
 0x6b7   :  { %v424_v20 = vadd.f32 1.0, %v1966_v19 }
 0x6b9   :  { %1967 = vrcp.f32 %v424_v20  ;;  %v181_v20 = vadd.f32 %v2400_v11, %v2441_v4 }
 0x6c3   :  { %v1968_v21 = vpop.eup %1967 }
 0x6c4   :  { %v428_v12 = vmul.f32 %v1968_v21, %v358_v52  ;;  %v178_v52 = vadd.f32 %v2400_v11, %v2437_v1 }
 0x727   :  { %v431_v22 = vpop.permute.xlu0 %430 }
 0x728   :  { %v433_v23 = vmul.f32 %v1968_v21, %v431_v22 }
 0x72a   :  { %435 = vrot.lane.b32.xlu1 %v433_v23, %s2250_s3 }
 0x79c   :  { %v436_v24 = vpop.permute.xlu1 %435 }
 0x79d   :  { %v438_v25 = vadd.f32 %v436_v24, %v428_v12 }
 0x79f   :  { %1969 = vtanh.f32 %v438_v25 }
 0x7a9   :  { %v1970_v26 = vpop.eup %1969 }
 0x7aa   :  { %441 = vrot.lane.b32.xlu0 %v1970_v26, %s2240_s19 }
 0x81c   :  { %v442_v27 = vpop.permute.xlu0 %441 }
 0x81d   :  { %v2455_v28 = vmul.f32 %v1968_v21, %v442_v27 }
 0x81f   :  { %v453_v29 = vpack.c.bf16 %v2455_v28, %v2455_v28 }
 0x821   :  { %455 = vrot.lane.b32.xlu1 %v453_v29, %s2250_s3 }
 0x893   :  { %v456_v30 = vpop.permute.xlu1 %455 }
 0x894   :  { %1813 = vmatmul.mubr.msk.bf16.vlgmr.msra.gmra.mrb[8].mxu1 %vm217_vm2, %v456_v30 }
 0x895   :  { %1825 = vmatpush3.bf16.msra.mxu1 %v2375_v2  ;;  %1828 = vmatprep.mubr.msk.bf16.mxu1 %vm2248_vm0, %v2247_v0 }
 0x896   :  { %1826 = vmatprep.subr.bf16.mxu1 %v2247_v0 }
 0x899   :  { %1827 = vmatpush3.bf16.msra.mxu1 %v2379_v9 }
 0x89a   :  { %1840 = vmatprep.subr.bf16.mxu1 %v2247_v0 }
 0x967   :  { %v494_v32 = vpop.f32.mrb[8].mxu1 }
 0x968   :  { %v500_v33 = vadd.f32 %v494_v32, %v173_v31  ;;  %v1814_v35 = vpop.f32.mrb[9].mxu1 }
 0x969   :  { %v497_v36 = vpop.f32.mrb[10].mxu1 }
 0x96a   :  { %1971 = vtanh.f32 %v500_v33  ;;  %v1815_v37 = vpop.f32.mrb[11].mxu1  ;;  %v1682_v39 = vmul.f32 -1.442695, %v500_v33 }
 0x96c   :  { %1973 = vpow2.f32 %v1682_v39  ;;  %v186_v39 = vadd.f32 %v2435_v63, %v2400_v11 }
 0x974   :  { %v1972_v38 = vpop.eup %1971 }
 0x975   :  { %510 = vrot.lane.b32.xlu0 %v1972_v38, %s2240_s19 }
 0x976   :  { %v1974_v40 = vpop.eup %1973 }
 0x977   :  { %v504_v41 = vadd.f32 1.0, %v1974_v40 }
 0x979   :  { %1975 = vrcp.f32 %v504_v41 }
 0x983   :  { %v1976_v42 = vpop.eup %1975 }
 0x984   :  { %v508_v15 = vmul.f32 %v1976_v42, %v438_v25 }
 0x9e7   :  { %v511_v43 = vpop.permute.xlu0 %510 }
 0x9e8   :  { %v513_v44 = vmul.f32 %v1976_v42, %v511_v43 }
 0x9ea   :  { %515 = vrot.lane.b32.xlu1 %v513_v44, %s2250_s3 }
 0xa5c   :  { %v516_v45 = vpop.permute.xlu1 %515 }
 0xa5d   :  { %v518_v46 = vadd.f32 %v516_v45, %v508_v15 }
 0xa5f   :  { %1977 = vtanh.f32 %v518_v46 }
 0xa69   :  { %v1978_v47 = vpop.eup %1977 }
 0xa6a   :  { %521 = vrot.lane.b32.xlu0 %v1978_v47, %s2240_s19 }
 0xadc   :  { %v522_v48 = vpop.permute.xlu0 %521 }
 0xadd   :  { %v2472_v49 = vmul.f32 %v1976_v42, %v522_v48 }
 0xadf   :  { %v533_v50 = vpack.c.bf16 %v2472_v49, %v2472_v49 }
 0xae1   :  { %535 = vrot.lane.b32.xlu1 %v533_v50, %s2250_s3 }
 0xb53   :  { %v536_v51 = vpop.permute.xlu1 %535 }
 0xb54   :  { %1821 = vmatmul.mubr.msk.bf16.vlgmr.msra.gmra.mrb[12].mxu0 %vm217_vm2, %v536_v51 }
 0xb55   :  { %1833 = vmatpush3.bf16.msra.mxu0 %v2375_v2  ;;  %1836 = vmatprep.mubr.msk.bf16.mxu0 %vm2248_vm0, %v2247_v0 }
 0xb56   :  { %1834 = vmatprep.subr.bf16.mxu0 %v2247_v0 }
 0xb59   :  { %1835 = vmatpush3.bf16.msra.mxu0 %v2379_v9 }
 0xc27   :  { %v574_v53 = vpop.f32.mrb[12].mxu0 }
 0xc28   :  { %v580_v54 = vadd.f32 %v574_v53, %v178_v52  ;;  %v1822_v55 = vpop.f32.mrb[13].mxu0 }
 0xc29   :  { %v577_v56 = vpop.f32.mrb[14].mxu0 }
 0xc2a   :  { %1979 = vtanh.f32 %v580_v54  ;;  %v1823_v57 = vpop.f32.mrb[15].mxu0  ;;  %v1684_v59 = vmul.f32 -1.442695, %v580_v54  ;;  %v1943_v56 = vld [vmem:[#allocation9] sm:$0xff]  }
 0xc2b   :  { %v1944_v57 = vld [vmem:[#allocation9 + $0x8] sm:$0xff]   ;;  %1848 = vmatprep.subr.bf16.mxu0 %v1943_v56 }
 0xc2c   :  { %1981 = vpow2.f32 %v1684_v59 }
 0xc34   :  { %v1980_v58 = vpop.eup %1979 }
 0xc35   :  { %590 = vrot.lane.b32.xlu0 %v1980_v58, %s2240_s19 }
 0xc36   :  { %v1982_v60 = vpop.eup %1981 }
 0xc37   :  { %v584_v62 = vadd.f32 1.0, %v1982_v60 }
 0xc39   :  { %1983 = vrcp.f32 %v584_v62 }
 0xc43   :  { %v1984_v5 = vpop.eup %1983 }
 0xc44   :  { %v588_v1 = vmul.f32 %v1984_v5, %v518_v46 }
 0xca7   :  { %v591_v6 = vpop.permute.xlu0 %590 }
 0xca8   :  { %v593_v7 = vmul.f32 %v1984_v5, %v591_v6 }
 0xcaa   :  { %595 = vrot.lane.b32.xlu1 %v593_v7, %s2250_s3 }
 0xd1c   :  { %v596_v8 = vpop.permute.xlu1 %595 }
 0xd1d   :  { %v598_v13 = vadd.f32 %v596_v8, %v588_v1  ;;  %v2541_v8 = vld [vmem:[%s2806_s5] sm:$0xff]  }
 0xd1f   :  { %1985 = vtanh.f32 %v598_v13 }
 0xd29   :  { %v1986_v14 = vpop.eup %1985 }
 0xd2a   :  { %601 = vrot.lane.b32.xlu0 %v1986_v14, %s2240_s19 }
 0xd9c   :  { %v602_v16 = vpop.permute.xlu0 %601 }
 0xd9d   :  { %v2488_v17 = vmul.f32 %v1984_v5, %v602_v16 }
 0xd9f   :  { %v613_v18 = vpack.c.bf16 %v2488_v17, %v2488_v17 }
 0xda1   :  { %615 = vrot.lane.b32.xlu1 %v613_v18, %s2250_s3 }
 0xe13   :  { %v616_v19 = vpop.permute.xlu1 %615 }
 0xe14   :  { %1829 = vmatmul.mubr.msk.bf16.vlgmr.msra.gmra.mrb[12].mxu1 %vm217_vm2, %v616_v19 }
 0xe15   :  { %1841 = vmatpush3.bf16.msra.mxu1 %v2375_v2  ;;  %1844 = vmatprep.mubr.msk.bf16.mxu1 %vm2248_vm0, %v2247_v0 }
 0xe16   :  { %1842 = vmatprep.subr.bf16.mxu1 %v2247_v0 }
 0xe19   :  { %1843 = vmatpush3.bf16.msra.mxu1 %v2379_v9 }
 0xe1a   :  { %1860 = vmatprep.subr.bf16.mxu1 %v2247_v0 }
 0xee7   :  { %v654_v21 = vpop.f32.mrb[12].mxu1 }
 0xee8   :  { %v660_v22 = vadd.f32 %v654_v21, %v181_v20  ;;  %v1830_v23 = vpop.f32.mrb[13].mxu1 }
 0xee9   :  { %v657_v12 = vpop.f32.mrb[14].mxu1 }
 0xeea   :  { %1987 = vtanh.f32 %v660_v22  ;;  %v1831_v24 = vpop.f32.mrb[15].mxu1  ;;  %v1686_v2 = vmul.f32 -1.442695, %v660_v22 }
 0xeec   :  { %1989 = vpow2.f32 %v1686_v2 }
 0xef4   :  { %v1988_v25 = vpop.eup %1987 }
 0xef5   :  { %670 = vrot.lane.b32.xlu0 %v1988_v25, %s2240_s19  ;;  %v2578_v25 = vld [vmem:[%s2807_s6] ss:$0 sm:$0xff]  ;;  %s2251_s6 = smov 96  }
 0xef6   :  { %v1990_v26 = vpop.eup %1989 }
 0xef7   :  { %v664_v27 = vadd.f32 1.0, %v1990_v26 }
 0xef9   :  { %1991 = vrcp.f32 %v664_v27 }
 0xf03   :  { %v1992_v9 = vpop.eup %1991 }
 0xf04   :  { %v668_v4 = vmul.f32 %v1992_v9, %v598_v13  ;;  %v2549_v13 = vld [vmem:[%s2806_s5 + $0x8] sm:$0xff]  }
 0xf67   :  { %v671_v29 = vpop.permute.xlu0 %670 }
 0xf68   :  { %v673_v30 = vmul.f32 %v1992_v9, %v671_v29 }
 0xf6a   :  { %675 = vrot.lane.b32.xlu1 %v673_v30, %s2250_s3 }
 0xfdc   :  { %v676_v31 = vpop.permute.xlu1 %675 }
 0xfdd   :  { %v678_v32 = vadd.f32 %v676_v31, %v668_v4 }
 0xfdf   :  { %1993 = vtanh.f32 %v678_v32 }
 0xfe9   :  { %v1994_v33 = vpop.eup %1993 }
 0xfea   :  { %681 = vrot.lane.b32.xlu0 %v1994_v33, %s2240_s19 }
0x105c   :  { %v682_v35 = vpop.permute.xlu0 %681 }
0x105d   :  { %v2505_v36 = vmul.f32 %v1992_v9, %v682_v35 }
0x105f   :  { %v693_v37 = vpack.c.bf16 %v2505_v36, %v2505_v36 }
0x1061   :  { %695 = vrot.lane.b32.xlu1 %v693_v37, %s2250_s3 }
0x10d3   :  { %v696_v38 = vpop.permute.xlu1 %695 }
0x10d4   :  { %1837 = vmatmul.mubr.msk.bf16.vlgmr.msra.gmra.mrb[16].mxu0 %vm217_vm2, %v696_v38 }
0x10d5   :  { %1849 = vmatpush3.bf16.msra.mxu0 %v1943_v56 }
0x10d6   :  { %1850 = vmatprep.subr.bf16.mxu0 %v1944_v57 }
0x10d9   :  { %1851 = vmatpush3.bf16.msra.mxu0 %v1944_v57 }
0x10da   :  { %1876 = vmatprep.subr.bf16.mxu0 %v2247_v0 }
0x11a7   :  { %v734_v40 = vpop.f32.mrb[16].mxu0 }
0x11a8   :  { %v740_v41 = vadd.f32 %v734_v40, %v186_v39  ;;  %v1838_v42 = vpop.f32.mrb[17].mxu0 }
0x11a9   :  { %v737_v43 = vpop.f32.mrb[18].mxu0 }
0x11aa   :  { %1995 = vtanh.f32 %v740_v41  ;;  %v1839_v44 = vpop.f32.mrb[19].mxu0  ;;  %v1688_v45 = vmul.f32 -1.442695, %v740_v41 }
0x11ac   :  { %1997 = vpow2.f32 %v1688_v45 }
0x11b4   :  { %v1996_v15 = vpop.eup %1995 }
0x11b5   :  { %750 = vrot.lane.b32.xlu0 %v1996_v15, %s2240_s19 }
0x11b6   :  { %v1998_v46 = vpop.eup %1997 }
0x11b7   :  { %v744_v47 = vadd.f32 1.0, %v1998_v46 }
0x11b9   :  { %1999 = vrcp.f32 %v744_v47 }
0x11c3   :  { %v2000_v48 = vpop.eup %1999 }
0x11c4   :  { %v748_v63 = vmul.f32 %v2000_v48, %v678_v32 }
0x1227   :  { %v751_v50 = vpop.permute.xlu0 %750 }
0x1228   :  { %v753_v51 = vmul.f32 %v2000_v48, %v751_v50 }
0x122a   :  { %755 = vrot.lane.b32.xlu1 %v753_v51, %s2250_s3 }
0x122e   :  { %287 = vrot.lane.b32.xlu1 %v2410_v34, %s2250_s3 }
0x1232   :  { %446 = vrot.lane.b32.xlu1 %v2455_v28, %s2250_s3 }
0x129c   :  { %v756_v52 = vpop.permute.xlu1 %755 }
0x129d   :  { %v2519_v53 = vadd.f32 %v756_v52, %v748_v63 }
0x129f   :  { %2001 = vtanh.f32 %v2519_v53 }
0x12a0   :  { %v288_v54 = vpop.permute.xlu1 %287 }
0x12a1   :  { %290 = vst.msk [vmem:[#allocation11] sm:$0xff] %vm217_vm2, %v288_v54 }
0x12a4   :  { %v447_v55 = vpop.permute.xlu1 %446 }
0x12a5   :  { %450 = vst.msk [vmem:[#allocation11 + $0x10] sm:$0xff] %vm217_vm2, %v447_v55 }
0x12a8   :  { %v857_v5 = vld [vmem:[#allocation11] sm:$0xff] }
0x12a9   :  { %v2002_v34 = vpop.eup %2001 }
0x12aa   :  { %761 = vrot.lane.b32.xlu0 %v2002_v34, %s2240_s19 }
0x12ae   :  { %366 = vrot.lane.b32.xlu0 %v2430_v61, %s2250_s3 }
0x12b2   :  { %526 = vrot.lane.b32.xlu0 %v2472_v49, %s2250_s3  ;;  %v859_v49 = vld [vmem:[#allocation11 + $0x10] sm:$0xff] }
0x131c   :  { %v762_v28 = vpop.permute.xlu0 %761 }
0x131d   :  { %v2530_v58 = vmul.f32 %v2000_v48, %v762_v28 }
0x131f   :  { %v773_v59 = vpack.c.bf16 %v2530_v58, %v2530_v58 }
0x1320   :  { %v367_v60 = vpop.permute.xlu0 %366 }
0x1321   :  { %370 = vst.msk [vmem:[#allocation11 + $0x8] sm:$0xff] %vm217_vm2, %v367_v60  ;;  %775 = vrot.lane.b32.xlu1 %v773_v59, %s2250_s3 }
0x1324   :  { %v527_v62 = vpop.permute.xlu0 %526 }
0x1325   :  { %530 = vst.msk [vmem:[#allocation11 + $0x18] sm:$0xff] %vm217_vm2, %v527_v62 }
0x1328   :  { %v858_v6 = vld [vmem:[#allocation11 + $0x8] sm:$0xff] }
0x1329   :  { %v865_v61 = vpack.c.bf16 %v858_v6, %v857_v5 }
0x132b   :  { %1852 = vmatprep.mubr.msk.bf16.mxu0 %vm217_vm2, %v865_v61 }
0x132c   :  { %v860_v7 = vld [vmem:[#allocation11 + $0x18] sm:$0xff] }
0x132d   :  { %v866_v1 = vpack.c.bf16 %v860_v7, %v859_v49 }
0x132f   :  { %1853 = vmatmul.mubr.msk.bf16.vlgmr.msra.gmra.mrb[20].mxu0 %vm217_vm2, %v866_v1 }
0x1330   :  { %1877 = vmatpush3.bf16.msra.mxu0 %v2541_v8 }
0x1331   :  { %1878 = vmatprep.subr.bf16.mxu0 %v2247_v0 }
0x1334   :  { %1879 = vmatpush3.bf16.msra.mxu0 %v2549_v13 }
0x1335   :  { %1892 = vmatprep.subr.bf16.mxu0 %v2247_v0 }
0x1393   :  { %v776_v14 = vpop.permute.xlu1 %775 }
0x1394   :  { %1845 = vmatmul.mubr.msk.bf16.vlgmr.msra.gmra.mrb[16].mxu1 %vm217_vm2, %v776_v14 }
0x1395   :  { %1861 = vmatpush3.bf16.msra.mxu1 %v2541_v8  ;;  %1864 = vmatprep.mubr.msk.bf16.mxu1 %vm2248_vm0, %v2247_v0 }
0x1396   :  { %1862 = vmatprep.subr.bf16.mxu1 %v2247_v0 }
0x1399   :  { %1863 = vmatpush3.bf16.msra.mxu1 %v2549_v13 }
0x139a   :  { %1868 = vmatprep.subr.bf16.mxu1 %v2247_v0 }
0x139c   :  { %1865 = vmatmul.mubr.bf16.vlgmr.msra.gmra.mrb[20].mxu1 %v2249_v10  ;;  %v189_v10 = vadd.f32 %v2439_v3, %v2400_v11 }
0x139d   :  { %1869 = vmatpush3.bf16.msra.mxu1 %v2541_v8  ;;  %1872 = vmatprep.mubr.msk.bf16.mxu1 %vm2248_vm0, %v2247_v0 }
0x139e   :  { %1870 = vmatprep.subr.bf16.mxu1 %v2247_v0 }
0x13a1   :  { %1871 = vmatpush3.bf16.msra.mxu1 %v2549_v13 }
0x13a2   :  { %1884 = vmatprep.subr.bf16.mxu1 %v2247_v0 }
0x1402   :  { %v2567_v16 = vpop.f32.mrb[20].mxu0 }
0x1403   :  { %v938_v18 = vpop.f32.mrb[21].mxu0 }
0x1404   :  { %v2569_v19 = vpop.f32.mrb[22].mxu0  ;;  %v939_v2 = vadd.f32 %v2578_v25, %v938_v18 }
0x1405   :  { %v2571_v20 = vpop.f32.mrb[23].mxu0 }
0x1406   :  { %v942_v34 = vadd.f32 %v2578_v25, %v2571_v20 }
0x1467   :  { %v814_v21 = vpop.f32.mrb[16].mxu1 }
0x1468   :  { %v820_v22 = vadd.f32 %v814_v21, %v189_v10  ;;  %v1846_v23 = vpop.f32.mrb[17].mxu1 }
0x1469   :  { %v817_v12 = vpop.f32.mrb[18].mxu1 }
0x146a   :  { %v1847_v24 = vpop.f32.mrb[19].mxu1  ;;  %v1690_v42 = vmul.f32 -1.442695, %v820_v22 }
0x146f   :  { %v1028_v26 = vpop.f32.mrb[20].mxu1 }
0x1470   :  { %v1034_v27 = vadd.f32 %v1028_v26, %v939_v2  ;;  %v1866_v9 = vpop.f32.mrb[21].mxu1 }
0x1471   :  { %v1031_v29 = vpop.f32.mrb[22].mxu1 }
0x1472   :  { %2003 = vtanh.f32 %v1034_v27  ;;  %v1867_v30 = vpop.f32.mrb[23].mxu1  ;;  %v1700_v11 = vmul.f32 -1.442695, %v1034_v27 }
0x1474   :  { %2005 = vpow2.f32 %v1700_v11 }
0x147c   :  { %v2004_v4 = vpop.eup %2003 }
0x147d   :  { %1044 = vrot.lane.b32.xlu0 %v2004_v4, %s2240_s19 }
0x147e   :  { %v2006_v3 = vpop.eup %2005 }
0x147f   :  { %v1038_v31 = vadd.f32 1.0, %v2006_v3 }
0x1481   :  { %2007 = vrcp.f32 %v1038_v31 }
0x148b   :  { %v2008_v32 = vpop.eup %2007 }
0x148c   :  { %v1042_v37 = vmul.f32 0.0, %v2008_v32 }
0x14ef   :  { %v1045_v33 = vpop.permute.xlu0 %1044 }
0x14f0   :  { %v1047_v35 = vmul.f32 %v2008_v32, %v1045_v33  ;;  %v947_v33 = vadd.f32 %v2567_v16, %v2578_v25 }
0x14f2   :  { %1049 = vrot.lane.b32.xlu1 %v1047_v35, %s2250_s3 }
0x1564   :  { %v1050_v38 = vpop.permute.xlu1 %1049 }
0x1565   :  { %v1052_v39 = vadd.f32 %v1050_v38, %v1042_v37 }
0x1567   :  { %2009 = vtanh.f32 %v1052_v39 }
0x1568   :  { %2011 = vtanh.f32 %v820_v22 }
0x1569   :  { %2013 = vpow2.f32 %v1690_v42 }
0x1571   :  { %v2010_v40 = vpop.eup %2009 }
0x1572   :  { %1055 = vrot.lane.b32.xlu0 %v2010_v40, %s2240_s19  ;;  %v2012_v41 = vpop.eup %2011 }
0x1573   :  { %v2014_v43 = vpop.eup %2013 }
0x1574   :  { %v824_v44 = vadd.f32 1.0, %v2014_v43 }
0x1576   :  { %830 = vrot.lane.b32.xlu0 %v2012_v41, %s2240_s19  ;;  %2015 = vrcp.f32 %v824_v44 }
0x1580   :  { %v2016_v47 = vpop.eup %2015 }
0x1581   :  { %v828_v63 = vmul.f32 %v2016_v47, %v2519_v53 }
0x15e4   :  { %v1056_v15 = vpop.permute.xlu0 %1055 }
0x15e5   :  { %v2585_v45 = vmul.f32 %v2008_v32, %v1056_v15 }
0x15e7   :  { %v1065_v46 = vpack.c.bf16 %v2585_v45, %v2585_v45 }
0x15e8   :  { %v831_v48 = vpop.permute.xlu0 %830 }
0x15e9   :  { %v833_v50 = vmul.f32 %v2016_v47, %v831_v48  ;;  %1067 = vrot.lane.b32.xlu1 %v1065_v46, %s2250_s3 }
0x15eb   :  { %835 = vrot.lane.b32.xlu0 %v833_v50, %s2250_s3 }
0x165b   :  { %v1068_v51 = vpop.permute.xlu1 %1067 }
0x165c   :  { %1873 = vmatmul.mubr.msk.bf16.vlgmr.msra.gmra.mrb[24].mxu1 %vm217_vm2, %v1068_v51 }
0x165d   :  { %v836_v52 = vpop.permute.xlu0 %835  ;;  %1885 = vmatpush3.bf16.msra.mxu1 %v2541_v8  ;;  %1888 = vmatprep.mubr.msk.bf16.mxu1 %vm2248_vm0, %v2247_v0 }
0x165e   :  { %v2596_v54 = vadd.f32 %v836_v52, %v828_v63  ;;  %1886 = vmatprep.subr.bf16.mxu1 %v2247_v0 }
0x1660   :  { %2017 = vtanh.f32 %v2596_v54 }
0x1661   :  { %1887 = vmatpush3.bf16.msra.mxu1 %v2549_v13 }
0x1662   :  { %1900 = vmatprep.subr.bf16.mxu1 %v2247_v0 }
0x166a   :  { %v2018_v55 = vpop.eup %2017 }
0x166b   :  { %841 = vrot.lane.b32.xlu0 %v2018_v55, %s2240_s19 }
0x166f   :  { %606 = vrot.lane.b32.xlu0 %v2488_v17, %s2250_s3 }
0x1673   :  { %766 = vrot.lane.b32.xlu0 %v2530_v58, %s2250_s3 }
0x16dd   :  { %v842_v53 = vpop.permute.xlu0 %841 }
0x16de   :  { %v844_v21 = vmul.f32 %v2016_v47, %v842_v53 }
0x16e1   :  { %v607_v56 = vpop.permute.xlu0 %606 }
0x16e2   :  { %610 = vst.msk [vmem:[#allocation11 + $0x20] sm:$0xff] %vm217_vm2, %v607_v56  ;;  %v950_v56 = vadd.f32 %v2569_v19, %v2578_v25 }
0x16e5   :  { %v767_v57 = vpop.permute.xlu0 %766 }
0x16e6   :  { %770 = vst.msk [vmem:[#allocation11 + $0x30] sm:$0xff] %vm217_vm2, %v767_v57 }
0x16ed   :  { %v863_v9 = vld [vmem:[#allocation11 + $0x30] sm:$0xff] }
0x172f   :  { %v1106_v28 = vpop.f32.mrb[24].mxu1 }
0x1730   :  { %v1112_v59 = vadd.f32 %v1106_v28, %v942_v34  ;;  %v1874_v60 = vpop.f32.mrb[25].mxu1 }
0x1731   :  { %v1109_v62 = vpop.f32.mrb[26].mxu1 }
0x1732   :  { %2019 = vtanh.f32 %v1112_v59  ;;  %v1875_v5 = vpop.f32.mrb[27].mxu1  ;;  %v1702_v58 = vmul.f32 -1.442695, %v1112_v59 }
0x1734   :  { %2021 = vpow2.f32 %v1702_v58 }
0x173c   :  { %v2020_v17 = vpop.eup %2019 }
0x173d   :  { %1122 = vrot.lane.b32.xlu1 %v2020_v17, %s2240_s19 }
0x173e   :  { %v2022_v6 = vpop.eup %2021 }
0x173f   :  { %v1116_v61 = vadd.f32 1.0, %v2022_v6 }
0x1741   :  { %2023 = vrcp.f32 %v1116_v61 }
0x174b   :  { %v2024_v49 = vpop.eup %2023 }
0x174c   :  { %v1120_v14 = vmul.f32 %v2024_v49, %v1052_v39 }
0x17af   :  { %v1123_v7 = vpop.permute.xlu1 %1122 }
0x17b0   :  { %v1125_v1 = vmul.f32 %v2024_v49, %v1123_v7 }
0x17b2   :  { %1127 = vrot.lane.b32.xlu1 %v1125_v1, %s2250_s3 }
0x1824   :  { %v1128_v18 = vpop.permute.xlu1 %1127 }
0x1825   :  { %v1130_v20 = vadd.f32 %v1128_v18, %v1120_v14 }
0x1827   :  { %2025 = vtanh.f32 %v1130_v20 }
0x1831   :  { %v2026_v10 = vpop.eup %2025 }
0x1832   :  { %1133 = vrot.lane.b32.xlu1 %v2026_v10, %s2240_s19 }
0x1836   :  { %686 = vrot.lane.b32.xlu1 %v2505_v36, %s2250_s3  ;;  %v861_v36 = vld [vmem:[#allocation11 + $0x20] sm:$0xff] }
0x183a   :  { %846 = vrot.lane.b32.xlu1 %v844_v21, %s2250_s3 }
0x18a4   :  { %v1134_v22 = vpop.permute.xlu1 %1133 }
0x18a5   :  { %v2617_v23 = vmul.f32 %v2024_v49, %v1134_v22 }
0x18a7   :  { %v1143_v12 = vpack.c.bf16 %v2617_v23, %v2617_v23 }
0x18a8   :  { %v687_v24 = vpop.permute.xlu1 %686 }
0x18a9   :  { %690 = vst.msk [vmem:[#allocation11 + $0x28] sm:$0xff] %vm217_vm2, %v687_v24  ;;  %1145 = vrot.lane.b32.xlu0 %v1143_v12, %s2250_s3 }
0x18ac   :  { %v847_v2 = vpop.permute.xlu1 %846 }
0x18ad   :  { %850 = vst.msk [vmem:[#allocation11 + $0x38] sm:$0xff] %vm217_vm2, %v847_v2  ;;  %851 = vst.msk [vmem:[#allocation12] sm:$0xff] %vm217_vm2, %v847_v2 }
0x18b0   :  { %v862_v26 = vld [vmem:[#allocation11 + $0x28] sm:$0xff] }
0x18b1   :  { %v867_v27 = vpack.c.bf16 %v862_v26, %v861_v36 }
0x18b3   :  { %1856 = vmatprep.mubr.msk.bf16.mxu0 %vm217_vm2, %v867_v27 }
0x18b4   :  { %v864_v29 = vld [vmem:[#allocation11 + $0x38] sm:$0xff] }
0x18b5   :  { %v868_v30 = vpack.c.bf16 %v864_v29, %v863_v9 }
0x18b7   :  { %1857 = vmatmul.mubr.msk.bf16.gmra.mrb[24].mxu0 %vm217_vm2, %v868_v30 }
0x18b8   :  { %1880 = vmatprep.mubr.msk.bf16.mxu0 %vm2248_vm0, %v2247_v0 }
0x191b   :  { %v1146_v4 = vpop.permute.xlu0 %1145 }
0x191c   :  { %1881 = vmatmul.mubr.msk.bf16.vlgmr.msra.gmra.mrb[28].mxu0 %vm217_vm2, %v1146_v4 }
0x191d   :  { %1893 = vmatpush3.bf16.msra.mxu0 %v2541_v8  ;;  %1896 = vmatprep.mubr.msk.bf16.mxu0 %vm2248_vm0, %v2247_v0 }
0x191e   :  { %1894 = vmatprep.subr.bf16.mxu0 %v2247_v0 }
0x1921   :  { %1895 = vmatpush3.bf16.msra.mxu0 %v2549_v13 }
0x1922   :  { %1908 = vmatprep.subr.bf16.mxu0 %v2247_v0 }
0x198a   :  { %v2636_v11 = vpop.f32.mrb[24].mxu0 }
0x198b   :  { %v2638_v3 = vpop.f32.mrb[25].mxu0 }
0x198c   :  { %v2640_v31 = vpop.f32.mrb[26].mxu0  ;;  %v955_v22 = vadd.f32 %v2578_v25, %v2638_v3 }
0x198d   :  { %v2642_v32 = vpop.f32.mrb[27].mxu0 }
0x19ef   :  { %v1184_v35 = vpop.f32.mrb[28].mxu0 }
0x19f0   :  { %v1190_v37 = vadd.f32 %v1184_v35, %v947_v33  ;;  %v1882_v38 = vpop.f32.mrb[29].mxu0 }
0x19f1   :  { %v1187_v39 = vpop.f32.mrb[30].mxu0 }
0x19f2   :  { %2027 = vtanh.f32 %v1190_v37  ;;  %v1883_v40 = vpop.f32.mrb[31].mxu0  ;;  %v1704_v42 = vmul.f32 -1.442695, %v1190_v37 }
0x19f4   :  { %2029 = vpow2.f32 %v1704_v42 }
0x19fc   :  { %v2028_v41 = vpop.eup %2027 }
0x19fd   :  { %1200 = vrot.lane.b32.xlu1 %v2028_v41, %s2240_s19 }
0x19fe   :  { %v2030_v43 = vpop.eup %2029 }
0x19ff   :  { %v1194_v44 = vadd.f32 1.0, %v2030_v43 }
0x1a01   :  { %2031 = vrcp.f32 %v1194_v44  ;;  %v958_v44 = vadd.f32 %v2578_v25, %v2642_v32 }
0x1a0b   :  { %v2032_v15 = vpop.eup %2031 }
0x1a0c   :  { %v1198_v16 = vmul.f32 %v2032_v15, %v1130_v20 }
0x1a6f   :  { %v1201_v46 = vpop.permute.xlu1 %1200 }
0x1a70   :  { %v1203_v47 = vmul.f32 %v2032_v15, %v1201_v46 }
0x1a72   :  { %1205 = vrot.lane.b32.xlu0 %v1203_v47, %s2250_s3 }
0x1ae4   :  { %v1206_v48 = vpop.permute.xlu0 %1205 }
0x1ae5   :  { %v1208_v50 = vadd.f32 %v1206_v48, %v1198_v16 }
0x1ae7   :  { %2033 = vtanh.f32 %v1208_v50 }
0x1af1   :  { %v2034_v51 = vpop.eup %2033 }
0x1af2   :  { %1211 = vrot.lane.b32.xlu1 %v2034_v51, %s2240_s19 }
0x1b64   :  { %v1212_v63 = vpop.permute.xlu1 %1211 }
0x1b65   :  { %v2649_v52 = vmul.f32 %v2032_v15, %v1212_v63 }
0x1b67   :  { %v1221_v55 = vpack.c.bf16 %v2649_v52, %v2649_v52 }
0x1b69   :  { %1223 = vrot.lane.b32.xlu0 %v1221_v55, %s2250_s3 }
0x1bdb   :  { %v1224_v53 = vpop.permute.xlu0 %1223 }
0x1bdc   :  { %1889 = vmatmul.mubr.msk.bf16.vlgmr.msra.gmra.mrb[28].mxu1 %vm217_vm2, %v1224_v53 }
0x1bdd   :  { %1901 = vmatpush3.bf16.msra.mxu1 %v2541_v8  ;;  %1904 = vmatprep.mubr.msk.bf16.mxu1 %vm2248_vm0, %v2247_v0 }
0x1bde   :  { %1902 = vmatprep.subr.bf16.mxu1 %v2247_v0 }
0x1be1   :  { %1903 = vmatpush3.bf16.msra.mxu1 %v2549_v13 }
0x1be2   :  { %1916 = vmatprep.subr.bf16.mxu1 %v2247_v0 }
0x1caf   :  { %v1262_v57 = vpop.f32.mrb[28].mxu1 }
0x1cb0   :  { %v1268_v34 = vadd.f32 %v1262_v57, %v950_v56  ;;  %v1890_v28 = vpop.f32.mrb[29].mxu1 }
0x1cb1   :  { %v1265_v59 = vpop.f32.mrb[30].mxu1 }
0x1cb2   :  { %2035 = vtanh.f32 %v1268_v34  ;;  %v1891_v60 = vpop.f32.mrb[31].mxu1  ;;  %v1706_v5 = vmul.f32 -1.442695, %v1268_v34 }
0x1cb4   :  { %2037 = vpow2.f32 %v1706_v5 }
0x1cbc   :  { %v2036_v62 = vpop.eup %2035 }
0x1cbd   :  { %1278 = vrot.lane.b32.xlu1 %v2036_v62, %s2240_s19  ;;  %v963_v62 = vadd.f32 %v2636_v11, %v2578_v25 }
0x1cbe   :  { %v2038_v17 = vpop.eup %2037 }
0x1cbf   :  { %v1272_v58 = vadd.f32 1.0, %v2038_v17 }
0x1cc1   :  { %2039 = vrcp.f32 %v1272_v58 }
0x1ccb   :  { %v2040_v6 = vpop.eup %2039 }
0x1ccc   :  { %v1276_v19 = vmul.f32 %v2040_v6, %v1208_v50 }
0x1d2f   :  { %v1279_v61 = vpop.permute.xlu1 %1278 }
0x1d30   :  { %v1281_v49 = vmul.f32 %v2040_v6, %v1279_v61 }
0x1d32   :  { %1283 = vrot.lane.b32.xlu0 %v1281_v49, %s2250_s3 }
0x1da4   :  { %v1284_v7 = vpop.permute.xlu0 %1283 }
0x1da5   :  { %v1286_v1 = vadd.f32 %v1284_v7, %v1276_v19 }
0x1da7   :  { %2041 = vtanh.f32 %v1286_v1 }
0x1db1   :  { %v2042_v14 = vpop.eup %2041 }
0x1db2   :  { %1289 = vrot.lane.b32.xlu1 %v2042_v14, %s2240_s19 }
0x1e24   :  { %v1290_v18 = vpop.permute.xlu1 %1289 }
0x1e25   :  { %v2666_v20 = vmul.f32 %v2040_v6, %v1290_v18 }
0x1e27   :  { %v1299_v10 = vpack.c.bf16 %v2666_v20, %v2666_v20 }
0x1e29   :  { %1301 = vrot.lane.b32.xlu0 %v1299_v10, %s2250_s3 }
0x1e9b   :  { %v1302_v21 = vpop.permute.xlu0 %1301 }
0x1e9c   :  { %1897 = vmatmul.mubr.msk.bf16.vlgmr.msra.gmra.mrb[32].mxu0 %vm217_vm2, %v1302_v21 }
0x1e9d   :  { %1909 = vmatpush3.bf16.msra.mxu0 %v2541_v8  ;;  %1912 = vmatprep.mubr.msk.bf16.mxu0 %vm2248_vm0, %v2247_v0 }
0x1e9e   :  { %1910 = vmatprep.subr.bf16.mxu0 %v2247_v0 }
0x1ea1   :  { %1911 = vmatpush3.bf16.msra.mxu0 %v2549_v13 }
0x1f6f   :  { %v1340_v12 = vpop.f32.mrb[32].mxu0 }
0x1f70   :  { %v1346_v24 = vadd.f32 %v1340_v12, %v955_v22  ;;  %v1898_v2 = vpop.f32.mrb[33].mxu0 }
0x1f71   :  { %v1343_v36 = vpop.f32.mrb[34].mxu0 }
0x1f72   :  { %2043 = vtanh.f32 %v1346_v24  ;;  %v1899_v26 = vpop.f32.mrb[35].mxu0  ;;  %v1708_v9 = vmul.f32 -1.442695, %v1346_v24 }
0x1f74   :  { %2045 = vpow2.f32 %v1708_v9 }
0x1f7c   :  { %v2044_v27 = vpop.eup %2043 }
0x1f7d   :  { %1356 = vrot.lane.b32.xlu1 %v2044_v27, %s2240_s19  ;;  %v966_v27 = vadd.f32 %v2640_v31, %v2578_v25 }
0x1f7e   :  { %v2046_v29 = vpop.eup %2045 }
0x1f7f   :  { %v1350_v30 = vadd.f32 1.0, %v2046_v29 }
0x1f81   :  { %2047 = vrcp.f32 %v1350_v30 }
0x1f8b   :  { %v2048_v4 = vpop.eup %2047 }
0x1f8c   :  { %v1354_v3 = vmul.f32 %v2048_v4, %v1286_v1 }
0x1fef   :  { %v1357_v33 = vpop.permute.xlu1 %1356 }
0x1ff0   :  { %v1359_v35 = vmul.f32 %v2048_v4, %v1357_v33 }
0x1ff2   :  { %1361 = vrot.lane.b32.xlu0 %v1359_v35, %s2250_s3 }
0x2064   :  { %v1362_v37 = vpop.permute.xlu0 %1361 }
0x2065   :  { %v1364_v38 = vadd.f32 %v1362_v37, %v1354_v3 }
0x2067   :  { %2049 = vtanh.f32 %v1364_v38 }
0x2071   :  { %v2050_v39 = vpop.eup %2049 }
0x2072   :  { %1367 = vrot.lane.b32.xlu1 %v2050_v39, %s2240_s19 }
0x20e4   :  { %v1368_v40 = vpop.permute.xlu1 %1367 }
0x20e5   :  { %v2682_v41 = vmul.f32 %v2048_v4, %v1368_v40 }
0x20e7   :  { %v1377_v42 = vpack.c.bf16 %v2682_v41, %v2682_v41 }
0x20e9   :  { %1379 = vrot.lane.b32.xlu0 %v1377_v42, %s2250_s3 }
0x215b   :  { %v1380_v43 = vpop.permute.xlu0 %1379 }
0x215c   :  { %1905 = vmatmul.mubr.msk.bf16.vlgmr.msra.gmra.mrb[32].mxu1 %vm217_vm2, %v1380_v43 }
0x215d   :  { %1917 = vmatpush3.bf16.msra.mxu1 %v2541_v8  ;;  %1920 = vmatprep.mubr.msk.bf16.mxu1 %vm2248_vm0, %v2247_v0 }
0x215e   :  { %1918 = vmatprep.subr.bf16.mxu1 %v2247_v0 }
0x2161   :  { %1919 = vmatpush3.bf16.msra.mxu1 %v2549_v13 }
0x222f   :  { %v1418_v15 = vpop.f32.mrb[32].mxu1 }
0x2230   :  { %v1424_v46 = vadd.f32 %v1418_v15, %v958_v44  ;;  %v1906_v47 = vpop.f32.mrb[33].mxu1 }
0x2231   :  { %v1421_v16 = vpop.f32.mrb[34].mxu1 }
0x2232   :  { %2051 = vtanh.f32 %v1424_v46  ;;  %v1907_v48 = vpop.f32.mrb[35].mxu1  ;;  %v1710_v8 = vmul.f32 -1.442695, %v1424_v46 }
0x2234   :  { %2053 = vpow2.f32 %v1710_v8 }
0x223c   :  { %v2052_v50 = vpop.eup %2051 }
0x223d   :  { %1434 = vrot.lane.b32.xlu1 %v2052_v50, %s2240_s19 }
0x223e   :  { %v2054_v51 = vpop.eup %2053 }
0x223f   :  { %v1428_v63 = vadd.f32 1.0, %v2054_v51 }
0x2241   :  { %2055 = vrcp.f32 %v1428_v63 }
0x224b   :  { %v2056_v0 = vpop.eup %2055 }
0x224c   :  { %v1432_v32 = vmul.f32 %v2056_v0, %v1364_v38 }
0x22af   :  { %v1435_v55 = vpop.permute.xlu1 %1434 }
0x22b0   :  { %v1437_v13 = vmul.f32 %v2056_v0, %v1435_v55 }
0x22b2   :  { %1439 = vrot.lane.b32.xlu0 %v1437_v13, %s2250_s3 }
0x2324   :  { %v1440_v53 = vpop.permute.xlu0 %1439 }
0x2325   :  { %v1442_v56 = vadd.f32 %v1440_v53, %v1432_v32 }
0x2327   :  { %2057 = vtanh.f32 %v1442_v56 }
0x2331   :  { %v2058_v57 = vpop.eup %2057 }
0x2332   :  { %1445 = vrot.lane.b32.xlu1 %v2058_v57, %s2240_s19 }
0x23a4   :  { %v1446_v34 = vpop.permute.xlu1 %1445 }
0x23a5   :  { %v2698_v28 = vmul.f32 %v2056_v0, %v1446_v34 }
0x23a7   :  { %v1455_v59 = vpack.c.bf16 %v2698_v28, %v2698_v28 }
0x23a9   :  { %1457 = vrot.lane.b32.xlu0 %v1455_v59, %s2250_s3 }
0x241b   :  { %v1458_v60 = vpop.permute.xlu0 %1457 }
0x241c   :  { %1913 = vmatmul.mubr.msk.bf16.vlgmr.msra.gmra.mrb[36].mxu0 %vm217_vm2, %v1458_v60 }
0x24ef   :  { %v1496_v5 = vpop.f32.mrb[36].mxu0 }
0x24f0   :  { %v1502_v17 = vadd.f32 %v1496_v5, %v963_v62  ;;  %v1914_v58 = vpop.f32.mrb[37].mxu0 }
0x24f1   :  { %v1499_v6 = vpop.f32.mrb[38].mxu0 }
0x24f2   :  { %2059 = vtanh.f32 %v1502_v17  ;;  %v1915_v61 = vpop.f32.mrb[39].mxu0  ;;  %v1712_v19 = vmul.f32 -1.442695, %v1502_v17 }
0x24f4   :  { %2061 = vpow2.f32 %v1712_v19 }
0x24fc   :  { %v2060_v49 = vpop.eup %2059 }
0x24fd   :  { %1512 = vrot.lane.b32.xlu1 %v2060_v49, %s2240_s19 }
0x24fe   :  { %v2062_v7 = vpop.eup %2061 }
0x24ff   :  { %v1506_v1 = vadd.f32 1.0, %v2062_v7 }
0x2501   :  { %2063 = vrcp.f32 %v1506_v1 }
0x250b   :  { %v2064_v14 = vpop.eup %2063 }
0x250c   :  { %v1510_v11 = vmul.f32 %v2064_v14, %v1442_v56 }
0x256f   :  { %v1513_v18 = vpop.permute.xlu1 %1512 }
0x2570   :  { %v1515_v10 = vmul.f32 %v2064_v14, %v1513_v18 }
0x2572   :  { %1517 = vrot.lane.b32.xlu0 %v1515_v10, %s2250_s3 }
0x25e4   :  { %v1518_v21 = vpop.permute.xlu0 %1517 }
0x25e5   :  { %v1520_v22 = vadd.f32 %v1518_v21, %v1510_v11 }
0x25e7   :  { %2065 = vtanh.f32 %v1520_v22 }
0x25f1   :  { %v2066_v12 = vpop.eup %2065 }
0x25f2   :  { %1523 = vrot.lane.b32.xlu1 %v2066_v12, %s2240_s19 }
0x2664   :  { %v1524_v24 = vpop.permute.xlu1 %1523 }
0x2665   :  { %v1526_v2 = vmul.f32 %v2064_v14, %v1524_v24 }
0x2667   :  { %v1533_v36 = vpack.c.bf16 %v1526_v2, %v1526_v2 }
0x2669   :  { %1535 = vrot.lane.b32.xlu0 %v1533_v36, %s2250_s3 }
0x26db   :  { %v1536_v26 = vpop.permute.xlu0 %1535 }
0x26dc   :  { %1921 = vmatmul.mubr.msk.bf16.vlgmr.msra.gmra.mrb[36].mxu1 %vm217_vm2, %v1536_v26 }
0x27af   :  { %v1574_v9 = vpop.f32.mrb[36].mxu1 }
0x27b0   :  { %v1580_v29 = vadd.f32 %v1574_v9, %v966_v27  ;;  %v1922_v30 = vpop.f32.mrb[37].mxu1 }
0x27b1   :  { %v1577_v4 = vpop.f32.mrb[38].mxu1 }
0x27b2   :  { %2067 = vtanh.f32 %v1580_v29  ;;  %v1923_v33 = vpop.f32.mrb[39].mxu1  ;;  %v1714_v3 = vmul.f32 -1.442695, %v1580_v29 }
0x27b4   :  { %2069 = vpow2.f32 %v1714_v3 }
0x27bc   :  { %v2068_v35 = vpop.eup %2067 }
0x27bd   :  { %1590 = vrot.lane.b32.xlu1 %v2068_v35, %s2240_s19 }
0x27be   :  { %v2070_v37 = vpop.eup %2069 }
0x27bf   :  { %v1584_v38 = vadd.f32 1.0, %v2070_v37 }
0x27c1   :  { %2071 = vrcp.f32 %v1584_v38 }
0x27cb   :  { %v2072_v39 = vpop.eup %2071 }
0x27cc   :  { %v1588_v25 = vmul.f32 %v2072_v39, %v1520_v22 }
0x282f   :  { %v1591_v40 = vpop.permute.xlu1 %1590 }
0x2830   :  { %v1593_v42 = vmul.f32 %v2072_v39, %v1591_v40 }
0x2832   :  { %1595 = vrot.lane.b32.xlu0 %v1593_v42, %s2250_s3 }
0x2836   :  { %1060 = vrot.lane.b32.xlu0 %v2585_v45, %s2250_s3 }
0x283a   :  { %1216 = vrot.lane.b32.xlu0 %v2649_v52, %s2250_s3 }
0x283e   :  { %1372 = vrot.lane.b32.xlu0 %v2682_v41, %s2250_s3 }
0x28a4   :  { %v1596_v31 = vpop.permute.xlu0 %1595 }
0x28a5   :  { %v1598_v43 = vadd.f32 %v1596_v31, %v1588_v25 }
0x28a7   :  { %2073 = vtanh.f32 %v1598_v43 }
0x28a8   :  { %v1061_v44 = vpop.permute.xlu0 %1060 }
0x28a9   :  { %1063 = vst.msk [vmem:[#allocation11] sm:$0xff] %vm217_vm2, %v1061_v44 }
0x28ac   :  { %v1217_v15 = vpop.permute.xlu0 %1216 }
0x28ad   :  { %1219 = vst.msk [vmem:[#allocation11 + $0x10] sm:$0xff] %vm217_vm2, %v1217_v15 }
0x28b0   :  { %v1373_v46 = vpop.permute.xlu0 %1372 }
0x28b1   :  { %v2074_v47 = vpop.eup %2073  ;;  %1375 = vst.msk [vmem:[#allocation11 + $0x20] sm:$0xff] %vm217_vm2, %v1373_v46 }
0x28b2   :  { %1601 = vrot.lane.b32.xlu1 %v2074_v47, %s2240_s19  ;;  %s2252_s19 = smov [#allocation12]  }
0x28b3   :  { %s1635_s27 = sshll.u32 %s2252_s19, 4  ;;  %s1636_s27 = int_to_ptr.vmem [resolvable:$true] %s1635_s27 }
0x28b4   :  { %s2163_s30 = scalar_lea.vmem %s1636_s27, 256  ;;  %p2168_p5 = scmp.lt.s32.totalorder %s1636_s27, %s1636_s27 }
0x28b5   :  { %p2164_p4 = scmp.ne.s32.totalorder %s1636_s27, %s2163_s30  ;;  %p2169_p6 = scmp.lt.s32.totalorder %s2163_s30, %s2163_s30 }
0x28b6   :  { %853 = vrot.lane.b32.xlu1 %v2596_v54, %s2251_s6 }
0x28b7   :  { %p2170_p7 = por %p2169_p6, %p2168_p5 }
0x28b9   :  { %p2171_p8 = pnand %p2170_p7, %p2164_p4 }
0x28ba   :  { %1138 = vrot.lane.b32.xlu1 %v2617_v23, %s2250_s3 }
0x28be   :  { %1294 = vrot.lane.b32.xlu1 %v2666_v20, %s2250_s3 }
0x28c2   :  { %1450 = vrot.lane.b32.xlu1 %v2698_v28, %s2250_s3 }
0x28c6   :  { %1613 = vrot.lane.b32.xlu1 %v1598_v43, %s2251_s6 }
0x2924   :  { %v1602_v45 = vpop.permute.xlu1 %1601 }
0x2925   :  { %v1604_v52 = vmul.f32 %v2072_v39, %v1602_v45 }
0x2927   :  { %1606 = vrot.lane.b32.xlu0 %v1604_v52, %s2250_s3 }
0x2928   :  { %v854_v41 = vpop.permute.xlu1 %853 }
0x2929   :  { %856 = vst.msk [vmem:[#allocation14] sm:$0xff] %vm217_vm2, %v854_v41 }
0x292b   :  { %1528 = vrot.lane.b32.xlu0 %v1526_v2, %s2250_s3 }
0x292c   :  { %v1139_v54 = vpop.permute.xlu1 %1138 }
0x292d   :  { %1141 = vst.msk [vmem:[#allocation11 + $0x8] sm:$0xff] %vm217_vm2, %v1139_v54 }
0x2930   :  { %v1295_v23 = vpop.permute.xlu1 %1294 }
0x2931   :  { %1297 = vst.msk [vmem:[#allocation11 + $0x18] sm:$0xff] %vm217_vm2, %v1295_v23 }
0x2934   :  { %v1451_v20 = vpop.permute.xlu1 %1450 }
0x2935   :  { %1453 = vst.msk [vmem:[#allocation11 + $0x28] sm:$0xff] %vm217_vm2, %v1451_v20 }
0x2938   :  { %v1614_v16 = vpop.permute.xlu1 %1613 }
0x2939   :  { %1617 = vst.msk [vmem:[#allocation14 + $0x8] sm:$0xff] %vm217_vm2, %v1614_v16 }
0x2999   :  { %v1607_v48 = vpop.permute.xlu0 %1606 }
0x299a   :  { %1609 = vst.msk [vmem:[#allocation11 + $0x38] sm:$0xff] %vm217_vm2, %v1607_v48  ;;  %1611 = vst.msk [vmem:[#allocation12 + $0x8] sm:$0xff] %vm217_vm2, %v1607_v48 }
0x299b   :  { %2174 = shalt.err (!%p2171_p8)
}
0x299c   :  { %s2175_s13 = scalar_lea.hbm %s2809_s8, 256 }
0x299d   :  { %p2176_p9 = scmp.ne.s32.totalorder %s2809_s8, %s2175_s13  ;;  %p2179_p10 = scmp.lt.u32.totalorder %s2175_s13, %s2809_s8 }
0x299f   :  { %p2181_p11 = pnand %p2179_p10, %p2176_p9 }
0x29a1   :  { %2184 = shalt.err (!%p2181_p11)
}
0x29a2   :  { %1641 = dma.vmem_to_hbm [thread:$0]  %s1636_s27, 256, %s2809_s8, [#allocation13], %s2243_s1, %s2243_s1, %s2244_s10  }
0x29a3   :  { %s2185_s4 = scalar_lea.vmem %s2739_s0, 256  ;;  %p2190_p13 = scmp.lt.s32.totalorder %s2739_s0, %s2739_s0 }
0x29a4   :  { %p2186_p12 = scmp.ne.s32.totalorder %s2739_s0, %s2185_s4  ;;  %p2191_p0 = scmp.lt.s32.totalorder %s2185_s4, %s2185_s4 }
0x29a6   :  { %p2192_p1 = por %p2191_p0, %p2190_p13 }
0x29a8   :  { %p2193_p2 = pnand %p2192_p1, %p2186_p12 }
0x29aa   :  { %2196 = shalt.err (!%p2193_p2)
}
0x29ab   :  { %s2197_s18 = scalar_lea.hbm %s2810_s9, 256 }
0x29ac   :  { %p2198_p3 = scmp.ne.s32.totalorder %s2810_s9, %s2197_s18  ;;  %p2201_p4 = scmp.lt.u32.totalorder %s2197_s18, %s2810_s9 }
0x29ae   :  { %p2203_p5 = pnand %p2201_p4, %p2198_p3 }
0x29b0   :  { %2206 = shalt.err (!%p2203_p5)
}
0x29b1   :  { %1653 = dma.vmem_to_hbm [thread:$0]  %s2739_s0, 256, %s2810_s9, [#allocation13], %s2243_s1, %s2243_s1, %s2244_s10   ;;  %v1529_v50 = vpop.permute.xlu0 %1528 }
0x29b2   :  { %1531 = vst.msk [vmem:[#allocation11 + $0x30] sm:$0xff] %vm217_vm2, %v1529_v50  ;;  %s2207_s6 = scalar_lea.vmem %s2743_s29, 1024  ;;  %p2212_p7 = scmp.lt.s32.totalorder %s2743_s29, %s2743_s29 }
0x29b3   :  { %p2208_p6 = scmp.ne.s32.totalorder %s2743_s29, %s2207_s6  ;;  %p2213_p8 = scmp.lt.s32.totalorder %s2207_s6, %s2207_s6 }
0x29b5   :  { %p2214_p9 = por %p2213_p8, %p2212_p7 }
0x29b7   :  { %p2215_p10 = pnand %p2214_p9, %p2208_p6 }
0x29b9   :  { %2218 = shalt.err (!%p2215_p10)
}
0x29ba   :  { %s2219_s28 = scalar_lea.hbm %s2808_s7, 1024 }
0x29bb   :  { %p2220_p11 = scmp.ne.s32.totalorder %s2808_s7, %s2219_s28  ;;  %p2223_p12 = scmp.lt.u32.totalorder %s2219_s28, %s2808_s7 }
0x29bd   :  { %p2225_p13 = pnand %p2223_p12, %p2220_p11 }
0x29bf   :  { %2228 = shalt.err (!%p2225_p13)
}
0x29c0   :  { %1629 = dma.vmem_to_hbm [thread:$0]  %s2743_s29, 1024, %s2808_s7, [#allocation5], %s2243_s1, %s2243_s1, %s2244_s10  }
0x29c1   :  { %2235 = dma.done.wait [#allocation5], 1024  }
0x29c2   :  { %2236 = vsyncadd [#allocation5], 4294966272 }
0x29c3   :  { %2237 = dma.done.wait [#allocation13], 512  }
0x29c4   :  { %2238 = vsyncadd [#allocation13], 4294966784 }
0x29c5   :  { %1663 = vsyncpa [#allocation4], 1 }
0x29c6   :  { %1664 = vsyncpa [#allocation7], 1 }
0x29c7   :  { %1665 = vsyncpa [#allocation10], 1 }
0x29c8   :  { %1666 = vsyncpa [#allocation5], 1 }
0x29c9   :  { %1667 = vsyncpa [#allocation13], 1 }

</bundles_post_ra>
